<compile_context>
chip_gen: v5e
topology: v5e:2x2
jax: 0.10.0
libtpu: 0.0.40
codegen_flags: <defaults>
</compile_context>

<pallas_src>
import jax
import jax.numpy as jnp
from jax.experimental import pallas as pl
from jax.experimental.pallas import tpu as pltpu

FEAT = 2048      # inception_v3 fc.in_features
STEM_C = 128     # synthetic stem output channels (lane-dense)
PATCH = 4        # synthetic patch-embed "conv" kernel/stride (non-overlapping)
DROP_P = 0.5     # nn.Dropout() default
TB_CAP = 64      # batch-tile cap (conservative for v7x's 64 MiB VMEM)


# ---------------------------------------------------------------------------
# Fused encoder kernel (one grid step = TB batch rows):
#   [TB*P, K] @ [K, 128]  + b -> ReLU            (stem patch-embed "conv")
#   mean over P                                   (global average pool)
#   [TB, 128] @ [128, 2048] + b                   (to inception 2048-d feature)
#   [TB, 2048] @ [2048, E] + b -> ReLU -> *mask   (Encoder head: fc/ReLU/Dropout)
# ---------------------------------------------------------------------------
def _encoder_kernel(p_ref, cw_ref, cb_ref, pw_ref, pb_ref, fw_ref, fb_ref,
                    dm_ref, o_ref):
    tb, P, K = p_ref.shape
    C = cw_ref.shape[1]

    # Stem conv as one big matmul (fills MXU M dim); reshape is layout-free
    # since P is a multiple of 8/16 and K is the last (lane) dim.
    patches = p_ref[...].reshape(tb * P, K)                             # bf16
    stem = jnp.dot(patches, cw_ref[...],
                   preferred_element_type=jnp.float32)                  # [TB*P, C] f32
    stem = jnp.maximum(stem + cb_ref[...], 0.0)

    # Global average pool over spatial positions (per batch row).
    pooled = jnp.mean(stem.reshape(tb, P, C), axis=1)                   # [TB, C] f32

    # Projection to the 2048-d inception feature (bf16 MXU operands, f32 acc).
    feat = jnp.dot(pooled.astype(jnp.bfloat16), pw_ref[...],
                   preferred_element_type=jnp.float32) + pb_ref[...]    # [TB, 2048]

    # Encoder head: fc(2048 -> E) + ReLU + inverted dropout (pre-scaled mask).
    y = jnp.dot(feat.astype(jnp.bfloat16), fw_ref[...],
                preferred_element_type=jnp.float32) + fb_ref[...]       # [TB, E]
    y = jnp.maximum(y, 0.0)
    o_ref[...] = y * dm_ref[...].astype(jnp.float32)


# ---------------------------------------------------------------------------
# Host-side glue
# ---------------------------------------------------------------------------
def _round_up(n, m):
    return ((n + m - 1) // m) * m


def init_params(key, embed_size):
    k1, k2, k3, k4, k5, k6 = jax.random.split(key, 6)
    s = 0.05
    return {
        "conv_w": (s * jax.random.normal(k1, (PATCH * PATCH * 3, STEM_C),
                                         jnp.float32)).astype(jnp.bfloat16),
        "conv_b": s * jax.random.normal(k2, (1, STEM_C), jnp.float32),
        "proj_w": (s * jax.random.normal(k3, (STEM_C, FEAT),
                                         jnp.float32)).astype(jnp.bfloat16),
        "proj_b": s * jax.random.normal(k4, (1, FEAT), jnp.float32),
        "fc_w": (s * jax.random.normal(k5, (FEAT, embed_size),
                                       jnp.float32)).astype(jnp.bfloat16),
        "fc_b": s * jax.random.normal(k6, (1, embed_size), jnp.float32),
    }


def _extract_patches(images_nchw):
    """NCHW f32 -> [B, P, K] bf16 non-overlapping PATCHxPATCH patches (1x data)."""
    x = jnp.transpose(images_nchw, (0, 2, 3, 1))                # NHWC
    B, H, W, C = x.shape
    ph, pw = H // PATCH, W // PATCH
    # TODO(synk): a real conv stem handles edges; pixels past a PATCH multiple
    # are cropped here.
    patches = (
        x[:, : ph * PATCH, : pw * PATCH, :]
        .reshape(B, ph, PATCH, pw, PATCH, C)
        .transpose(0, 1, 3, 2, 4, 5)
        .reshape(B, ph * pw, PATCH * PATCH * C)
    )
    return patches.astype(jnp.bfloat16)


def _dropout_mask(key, B, E, training):
    """Pre-scaled inverted-dropout multipliers ({0, 1/(1-p)} or 1.0), bf16-exact."""
    if training:
        keep = jax.random.bernoulli(key, 1.0 - DROP_P, (B, E))
        return (keep.astype(jnp.float32) * (1.0 / (1.0 - DROP_P))).astype(jnp.bfloat16)
    return jnp.ones((B, E), jnp.bfloat16)


def encoder_forward(images_nchw, params, dropout_key, training=True):
    """images_nchw: [B, 3, H, W] float32 (PyTorch layout). Returns [B, embed_size]."""
    B = images_nchw.shape[0]
    E = params["fc_w"].shape[1]

    patches = _extract_patches(images_nchw)                      # [B, P, K] bf16
    _, P, K = patches.shape
    drop_mask = _dropout_mask(dropout_key, B, E, training)       # [B, E] bf16

    # Hard lane-dense output invariant: pad E to a multiple of 128, slice on host.
    E_pad = _round_up(E, 128)
    fc_w, fc_b = params["fc_w"], params["fc_b"]
    if E_pad != E:
        fc_w = jnp.pad(fc_w, ((0, 0), (0, E_pad - E)))
        fc_b = jnp.pad(fc_b, ((0, 0), (0, E_pad - E)))
        drop_mask = jnp.pad(drop_mask, ((0, 0), (0, E_pad - E)))

    # Batch blocking: TB rows per grid step.  Pad B to a multiple of TB
    # (TB is always a multiple of 8 -> sublane-aligned intermediates).
    TB = min(_round_up(B, 8), TB_CAP)
    B_pad = _round_up(B, TB)
    if B_pad != B:
        patches = jnp.pad(patches, ((0, B_pad - B), (0, 0), (0, 0)))
        drop_mask = jnp.pad(drop_mask, ((0, B_pad - B), (0, 0)))

    out = pl.pallas_call(
        _encoder_kernel,
        out_shape=jax.ShapeDtypeStruct((B_pad, E_pad), jnp.float32),
        grid=(B_pad // TB,),
        in_specs=[
            pl.BlockSpec((TB, P, K), lambda b: (b, 0, 0)),       # per-tile patches
            # Grid-invariant weights/biases: constant index_map -> VMEM-resident.
            pl.BlockSpec((K, STEM_C), lambda b: (0, 0)),
            pl.BlockSpec((1, STEM_C), lambda b: (0, 0)),
            pl.BlockSpec((STEM_C, FEAT), lambda b: (0, 0)),
            pl.BlockSpec((1, FEAT), lambda b: (0, 0)),
            pl.BlockSpec((FEAT, E_pad), lambda b: (0, 0)),
            pl.BlockSpec((1, E_pad), lambda b: (0, 0)),
            pl.BlockSpec((TB, E_pad), lambda b: (b, 0)),         # per-tile dropout mask
        ],
        out_specs=pl.BlockSpec((TB, E_pad), lambda b: (b, 0)),   # lane-dense output
        compiler_params=pltpu.CompilerParams(
            dimension_semantics=("parallel",),
            vmem_limit_bytes=48 * 1024 * 1024,
        ),
    )(
        patches,
        params["conv_w"], params["conv_b"],
        params["proj_w"], params["proj_b"],
        fc_w, fc_b,
        drop_mask,
    )
    return out[:B, :E]


def encoder_reference(images_nchw, params, dropout_key, training=True):
    """Pure-JAX reference with matching bf16-at-the-matmul numerics."""
    B = images_nchw.shape[0]
    E = params["fc_w"].shape[1]
    patches = _extract_patches(images_nchw).astype(jnp.float32)
    stem = jnp.maximum(
        patches @ params["conv_w"].astype(jnp.float32) + params["conv_b"], 0.0)
    pooled = jnp.mean(stem, axis=1)
    pooled = pooled.astype(jnp.bfloat16).astype(jnp.float32)
    feat = pooled @ params["proj_w"].astype(jnp.float32) + params["proj_b"]
    feat = feat.astype(jnp.bfloat16).astype(jnp.float32)
    y = jnp.maximum(feat @ params["fc_w"].astype(jnp.float32) + params["fc_b"], 0.0)
    mask = _dropout_mask(dropout_key, B, E, training).astype(jnp.float32)
    return y * mask


if __name__ == "__main__":
    key = jax.random.PRNGKey(0)
    k_img, k_par, k_drop = jax.random.split(key, 3)

    embed_size = 128                                             # lane-dense demo size
    images = jax.random.normal(k_img, (2, 3, 32, 32), jnp.float32)   # NCHW
    params = init_params(k_par, embed_size)

    out = encoder_forward(images, params, k_drop, training=True)
    out = jax.block_until_ready(out)

    ref = encoder_reference(images, params, k_drop, training=True)

    assert out.shape == (2, embed_size)
    assert bool(jnp.all(out >= 0.0))                 # ReLU (+ dropout zeros)
    assert bool(jnp.allclose(out, ref, rtol=2e-2, atol=2e-2))
    print("KERNEL_OK")
</pallas_src>

<mosaic_0001>
module attributes {stable_mosaic.version = 11 : i64} {
  func.func @_encoder_kernel(%arg0: i32, %arg1: memref<8x64x48xbf16, #tpu.memory_space<vmem>>, %arg2: memref<48x128xbf16, #tpu.memory_space<vmem>>, %arg3: memref<1x128xf32, #tpu.memory_space<vmem>>, %arg4: memref<128x2048xbf16, #tpu.memory_space<vmem>>, %arg5: memref<1x2048xf32, #tpu.memory_space<vmem>>, %arg6: memref<2048x128xbf16, #tpu.memory_space<vmem>>, %arg7: memref<1x128xf32, #tpu.memory_space<vmem>>, %arg8: memref<8x128xbf16, #tpu.memory_space<vmem>>, %arg9: memref<8x128xf32, #tpu.memory_space<vmem>>) attributes {dimension_semantics = [#tpu.dimension_semantics<parallel>], iteration_bounds = array<i64: 1>, scalar_prefetch = 0 : i64, scratch_operands = 0 : i64, tpu.core_type = #tpu.core_type<tc>, window_params = [{transform_indices = @transform_0, window_bounds = array<i64: 8, 64, 48>}, {pipeline_mode = #tpu.pipeline_mode<synchronous>, transform_indices = @transform_1, window_bounds = array<i64: 48, 128>}, {pipeline_mode = #tpu.pipeline_mode<synchronous>, transform_indices = @transform_2, window_bounds = array<i64: 1, 128>}, {pipeline_mode = #tpu.pipeline_mode<synchronous>, transform_indices = @transform_3, window_bounds = array<i64: 128, 2048>}, {pipeline_mode = #tpu.pipeline_mode<synchronous>, transform_indices = @transform_4, window_bounds = array<i64: 1, 2048>}, {pipeline_mode = #tpu.pipeline_mode<synchronous>, transform_indices = @transform_5, window_bounds = array<i64: 2048, 128>}, {pipeline_mode = #tpu.pipeline_mode<synchronous>, transform_indices = @transform_6, window_bounds = array<i64: 1, 128>}, {transform_indices = @transform_7, window_bounds = array<i64: 8, 128>}, {transform_indices = @transform_8, window_bounds = array<i64: 8, 128>}]} {
    %c0 = arith.constant 0 : index
    %c0_0 = arith.constant 0 : index
    %c0_1 = arith.constant 0 : index
    %0 = vector.load %arg1[%c0, %c0_0, %c0_1] : memref<8x64x48xbf16, #tpu.memory_space<vmem>>, vector<8x64x48xbf16>
    %1 = vector.shape_cast %0 : vector<8x64x48xbf16> to vector<512x48xbf16>
    %c0_2 = arith.constant 0 : index
    %c0_3 = arith.constant 0 : index
    %2 = vector.load %arg2[%c0_2, %c0_3] : memref<48x128xbf16, #tpu.memory_space<vmem>>, vector<48x128xbf16>
    %cst = arith.constant dense<0.000000e+00> : vector<512x128xf32>
    %3 = tpu.matmul %1, %2, %cst {dimension_numbers = #tpu.dot_dimension_numbers<[1], [0], [0], [1], [0, 0, 1, 1], [], []>} : vector<512x48xbf16>, vector<48x128xbf16>, vector<512x128xf32> -> vector<512x128xf32>
    %c0_4 = arith.constant 0 : index
    %c0_5 = arith.constant 0 : index
    %4 = vector.load %arg3[%c0_4, %c0_5] : memref<1x128xf32, #tpu.memory_space<vmem>>, vector<1x128xf32>
    %5 = vector.broadcast %4 : vector<1x128xf32> to vector<512x128xf32>
    %6 = arith.addf %3, %5 : vector<512x128xf32>
    %cst_6 = arith.constant 0.000000e+00 : f32
    %7 = vector.broadcast %cst_6 : f32 to vector<512x128xf32>
    %8 = arith.maximumf %6, %7 : vector<512x128xf32>
    %9 = vector.shape_cast %8 : vector<512x128xf32> to vector<8x64x128xf32>
    %cst_7 = arith.constant dense<0.000000e+00> : vector<8x128xf32>
    %10 = vector.multi_reduction <add>, %9, %cst_7 [1] : vector<8x64x128xf32> to vector<8x128xf32>
    %cst_8 = arith.constant 6.400000e+01 : f32
    %11 = vector.broadcast %cst_8 : f32 to vector<8x128xf32>
    %12 = arith.divf %10, %11 : vector<8x128xf32>
    %13 = arith.truncf %12 : vector<8x128xf32> to vector<8x128xbf16>
    %c0_9 = arith.constant 0 : index
    %c0_10 = arith.constant 0 : index
    %14 = vector.load %arg4[%c0_9, %c0_10] : memref<128x2048xbf16, #tpu.memory_space<vmem>>, vector<128x2048xbf16>
    %cst_11 = arith.constant dense<0.000000e+00> : vector<8x2048xf32>
    %15 = tpu.matmul %13, %14, %cst_11 {dimension_numbers = #tpu.dot_dimension_numbers<[1], [0], [0], [1], [0, 0, 1, 1], [], []>} : vector<8x128xbf16>, vector<128x2048xbf16>, vector<8x2048xf32> -> vector<8x2048xf32>
    %c0_12 = arith.constant 0 : index
    %c0_13 = arith.constant 0 : index
    %16 = vector.load %arg5[%c0_12, %c0_13] : memref<1x2048xf32, #tpu.memory_space<vmem>>, vector<1x2048xf32>
    %17 = vector.broadcast %16 : vector<1x2048xf32> to vector<8x2048xf32>
    %18 = arith.addf %15, %17 : vector<8x2048xf32>
    %19 = arith.truncf %18 : vector<8x2048xf32> to vector<8x2048xbf16>
    %c0_14 = arith.constant 0 : index
    %c0_15 = arith.constant 0 : index
    %20 = vector.load %arg6[%c0_14, %c0_15] : memref<2048x128xbf16, #tpu.memory_space<vmem>>, vector<2048x128xbf16>
    %cst_16 = arith.constant dense<0.000000e+00> : vector<8x128xf32>
    %21 = tpu.matmul %19, %20, %cst_16 {dimension_numbers = #tpu.dot_dimension_numbers<[1], [0], [0], [1], [0, 0, 1, 1], [], []>} : vector<8x2048xbf16>, vector<2048x128xbf16>, vector<8x128xf32> -> vector<8x128xf32>
    %c0_17 = arith.constant 0 : index
    %c0_18 = arith.constant 0 : index
    %22 = vector.load %arg7[%c0_17, %c0_18] : memref<1x128xf32, #tpu.memory_space<vmem>>, vector<1x128xf32>
    %23 = vector.broadcast %22 : vector<1x128xf32> to vector<8x128xf32>
    %24 = arith.addf %21, %23 : vector<8x128xf32>
    %cst_19 = arith.constant 0.000000e+00 : f32
    %25 = vector.broadcast %cst_19 : f32 to vector<8x128xf32>
    %26 = arith.maximumf %24, %25 : vector<8x128xf32>
    %c0_20 = arith.constant 0 : index
    %c0_21 = arith.constant 0 : index
    %27 = vector.load %arg8[%c0_20, %c0_21] : memref<8x128xbf16, #tpu.memory_space<vmem>>, vector<8x128xbf16>
    %28 = arith.extf %27 : vector<8x128xbf16> to vector<8x128xf32>
    %29 = arith.mulf %26, %28 : vector<8x128xf32>
    %c0_22 = arith.constant 0 : index
    %c0_23 = arith.constant 0 : index
    %30 = vector.load %arg9[%c0_22, %c0_23] : memref<8x128xf32, #tpu.memory_space<vmem>>, vector<8x128xf32>
    tpu.vector_store %arg9[%c0_22, %c0_23], %29 {strides = array<i32>} : memref<8x128xf32, #tpu.memory_space<vmem>>, vector<8x128xf32>,
    return
  }
  func.func @transform_0(%arg0: i32) -> (i32, i32, i32) {
    %c0_i32 = arith.constant 0 : i32
    %c0_i32_0 = arith.constant 0 : i32
    %c0_i32_1 = arith.constant 0 : i32
    return %arg0, %c0_i32, %c0_i32_0 : i32, i32, i32
  }
  func.func @transform_1(%arg0: i32) -> (i32, i32) {
    %c0_i32 = arith.constant 0 : i32
    %c0_i32_0 = arith.constant 0 : i32
    %c0_i32_1 = arith.constant 0 : i32
    return %c0_i32, %c0_i32_0 : i32, i32
  }
  func.func @transform_2(%arg0: i32) -> (i32, i32) {
    %c0_i32 = arith.constant 0 : i32
    %c0_i32_0 = arith.constant 0 : i32
    %c0_i32_1 = arith.constant 0 : i32
    return %c0_i32, %c0_i32_0 : i32, i32
  }
  func.func @transform_3(%arg0: i32) -> (i32, i32) {
    %c0_i32 = arith.constant 0 : i32
    %c0_i32_0 = arith.constant 0 : i32
    %c0_i32_1 = arith.constant 0 : i32
    return %c0_i32, %c0_i32_0 : i32, i32
  }
  func.func @transform_4(%arg0: i32) -> (i32, i32) {
    %c0_i32 = arith.constant 0 : i32
    %c0_i32_0 = arith.constant 0 : i32
    %c0_i32_1 = arith.constant 0 : i32
    return %c0_i32, %c0_i32_0 : i32, i32
  }
  func.func @transform_5(%arg0: i32) -> (i32, i32) {
    %c0_i32 = arith.constant 0 : i32
    %c0_i32_0 = arith.constant 0 : i32
    %c0_i32_1 = arith.constant 0 : i32
    return %c0_i32, %c0_i32_0 : i32, i32
  }
  func.func @transform_6(%arg0: i32) -> (i32, i32) {
    %c0_i32 = arith.constant 0 : i32
    %c0_i32_0 = arith.constant 0 : i32
    %c0_i32_1 = arith.constant 0 : i32
    return %c0_i32, %c0_i32_0 : i32, i32
  }
  func.func @transform_7(%arg0: i32) -> (i32, i32) {
    %c0_i32 = arith.constant 0 : i32
    %c0_i32_0 = arith.constant 0 : i32
    return %arg0, %c0_i32 : i32, i32
  }
  func.func @transform_8(%arg0: i32) -> (i32, i32) {
    %c0_i32 = arith.constant 0 : i32
    %c0_i32_0 = arith.constant 0 : i32
    return %arg0, %c0_i32 : i32, i32
  }
}

</mosaic_0001>

<bundles_post_ra>
// kernel: tpu_custom_call.1
= control target key start
LH: loop header
LB: loop body
LE: loop exit
PB: predicated region body
PF: predicated region fallthrough
CT: control target
= control target key end

     0   :  { %13 = vsyncpa [#allocation3], 0  ;;  %s5068_s0 = inlined_call_operand.vmem [shape: bf16[8,64,48], index: 0, kind: input, shape index: {}]   ;;  %s5069_s1 = inlined_call_operand.vmem [shape: bf16[48,128], index: 1, kind: input, shape index: {}]   ;;  %s5070_s2 = inlined_call_operand.vmem [shape: f32[1,128], index: 2, kind: input, shape index: {}]   ;;  %s5071_s3 = inlined_call_operand.hbm [shape: bf16[128,2048], index: 3, kind: input, shape index: {}]   ;;  %s5072_s4 = inlined_call_operand.vmem [shape: f32[1,2048], index: 4, kind: input, shape index: {}]   ;;  %s5073_s5 = inlined_call_operand.hbm [shape: bf16[2048,128], index: 5, kind: input, shape index: {}]   ;;  %s5074_s6 = inlined_call_operand.vmem [shape: f32[1,128], index: 6, kind: input, shape index: {}]   ;;  %s5075_s7 = inlined_call_operand.vmem [shape: bf16[8,128], index: 7, kind: input, shape index: {}]   ;;  %s5076_s8 = inlined_call_operand.hbm [shape: f32[8,128], index: 8, kind: output, shape index: {}]  }
   0x1   :  { %14 = vsyncpa [#allocation6], 0 }
   0x2   :  { %15 = vsyncpa [#allocation4], 0  ;;  %s26_s29 = sshll.u32 %s5071_s3, 4  ;;  %s4674_s30 = smov [#allocation2]   ;;  %s27_s29 = int_to_ptr.hbm [resolvable:$true] %s26_s29 }
   0x3   :  { %s28_s9 = sshll.u32 %s4674_s30, 4  ;;  %s41_s12 = sshll.u32 %s5073_s5, 4  ;;  %s29_s9 = int_to_ptr.vmem [resolvable:$true] %s28_s9  ;;  %s42_s12 = int_to_ptr.hbm [resolvable:$true] %s41_s12 }
   0x4   :  { %s4675_s13 = smov 1024   ;;  %s4676_s14 = smov 64  }
   0x5   :  { %34 = dma.hbm_to_vmem [thread:$0]  %s27_s29, 16384, %s29_s9, [#allocation3], %s4675_s13, %s4675_s13, %s4676_s14  }
   0x6   :  { %s4677_s15 = smov [#allocation5]   ;;  %s4678_s17 = smov 4  }
   0x7   :  { %s43_s16 = sshll.u32 %s4677_s15, 4  ;;  %s44_s16 = int_to_ptr.vmem [resolvable:$true] %s43_s16 }
   0x8   :  { %49 = dma.hbm_to_vmem [thread:$0]  %s42_s12, 16384, %s44_s16, [#allocation6], %s4676_s14, %s4676_s14, %s4678_s17  }
   0x9   :  { %4668 = dma.done.wait [#allocation3], 16384  }
   0xa   :  { %4669 = vsyncadd [#allocation3], 4294950912 }
   0xb   :  { %4670 = dma.done.wait [#allocation6], 16384  }
   0xc   :  { %4671 = vsyncadd [#allocation6], 4294950912  ;;  %v4321_v0 = vld [vmem:[%s5069_s1 + $0x10] sm:$0xff]  ;;  %v4320_v1 = vld [vmem:[%s5069_s1 + $0x8] sm:$0xff]  ;;  %vm315_vm0 = vcmask 392192   ;;  %vm952_vm2 = vcmask 1041409  }
   0xd   :  { %417 = vmatpush.bf16.msra.mxu0 %v4321_v0  ;;  %4579 = vmatpush.bf16.msra.mxu3 %v4321_v0  ;;  %v4319_v2 = vld [vmem:[%s5069_s1] sm:$0xff]  ;;  %v4288_v4 = vld [vmem:[%s5068_s0 + $0x8] sm:$0xff]  ;;  %v4289_v5 = vld [vmem:[%s5068_s0 + $0x10] sm:$0xff]  ;;  %vm954_vm3 = vcmask 1042434   ;;  %vm956_vm4 = vcmask 1043459   ;;  %vm958_vm5 = vcmask 1044484  }
   0xe   :  { %4578 = vmatpush.bf16.msra.mxu1 %v4321_v0  ;;  %v4287_v3 = vld [vmem:[%s5068_s0] sm:$0xff]  ;;  %v4290_v6 = vld [vmem:[%s5068_s0 + $0x18] sm:$0xff]  ;;  %v4292_v8 = vld [vmem:[%s5068_s0 + $0x28] sm:$0xff]  ;;  %vm960_vm6 = vcmask 1045509   ;;  %vm962_vm7 = vcmask 1046534   ;;  %vm964_vm8 = vcmask 1047559  }
   0xf   :  { %v4291_v7 = vld [vmem:[%s5068_s0 + $0x20] sm:$0xff]  ;;  %v4293_v9 = vld [vmem:[%s5068_s0 + $0x30] sm:$0xff]  ;;  %v4294_v10 = vld [vmem:[%s5068_s0 + $0x38] sm:$0xff]  ;;  %s4680_s5 = smov [#allocation7]   ;;  %s3080_s23 = sshll.u32 %s5076_s8, 4  ;;  %s3081_s23 = int_to_ptr.hbm [resolvable:$true] %s3080_s23 }
  0x10   :  { %v4295_v11 = vld [vmem:[%s5068_s0 + $0x40] sm:$0xff]  ;;  %v4296_v20 = vld [vmem:[%s5068_s0 + $0x48] sm:$0xff]  ;;  %v4297_v29 = vld [vmem:[%s5068_s0 + $0x50] sm:$0xff]  ;;  %s3078_s20 = sshll.u32 %s4680_s5, 4  ;;  %s3079_s20 = int_to_ptr.vmem [resolvable:$true] %s3078_s20 }
  0x11   :  { %418 = vmatpush.bf16.msra.mxu0 %v4320_v1  ;;  %4581 = vmatpush.bf16.msra.mxu3 %v4320_v1  ;;  %v4779_v13 = vld [vmem:[%s5070_s2] ss:$0 sm:$0xff]  ;;  %v4298_v38 = vld [vmem:[%s5068_s0 + $0x58] sm:$0xff]  ;;  %v4300_v55 = vld [vmem:[%s5068_s0 + $0x68] sm:$0xff] }
  0x12   :  { %4580 = vmatpush.bf16.msra.mxu1 %v4320_v1  ;;  %v4299_v47 = vld [vmem:[%s5068_s0 + $0x60] sm:$0xff]  ;;  %v4314_v63 = vld [vmem:[%s5068_s0 + $0xd8] sm:$0xff]  ;;  %v4301_v1 = vld [vmem:[%s5068_s0 + $0x70] sm:$0xff] }
  0x15   :  { %419 = vmatpush.bf16.msra.mxu0 %v4319_v2  ;;  %4583 = vmatpush.bf16.msra.mxu3 %v4319_v2 }
  0x16   :  { %4582 = vmatpush.bf16.msra.mxu1 %v4319_v2 }
  0x18   :  { %3231 = vmatmul.msk.bf16.vlgmr.msra.gmra.mxu0 %vm315_vm0, %v4287_v3  ;;  %3258 = vmatmul.msk.bf16.vlgmr.msra.gmra.mxu3 %vm315_vm0, %v4314_v63 }
  0x28   :  { %3232 = vmatmul.msk.bf16.gmra.mxu0 %vm315_vm0, %v4288_v4  ;;  %v4311_v4 = vld [vmem:[%s5068_s0 + $0xc0] sm:$0xff] }
  0x29   :  { %3255 = vmatmul.msk.bf16.vlgmr.msra.gmra.mxu1 %vm315_vm0, %v4311_v4  ;;  %v4318_v4 = vld [vmem:[%s5068_s0 + $0xf8] sm:$0xff] }
  0x38   :  { %3233 = vmatmul.msk.bf16.gmra.mxu0 %vm315_vm0, %v4289_v5 }
  0x48   :  { %3234 = vmatmul.msk.bf16.gmra.mxu0 %vm315_vm0, %v4290_v6 }
  0x58   :  { %3235 = vmatmul.msk.bf16.gmra.mxu0 %vm315_vm0, %v4291_v7 }
  0x68   :  { %3236 = vmatmul.msk.bf16.gmra.mxu0 %vm315_vm0, %v4292_v8 }
  0x78   :  { %3237 = vmatmul.msk.bf16.gmra.mxu0 %vm315_vm0, %v4293_v9  ;;  %v4679_v9 = vmov 64.0  }
  0x79   :  { %4593 = vrcp.f32 %v4679_v9 }
  0x88   :  { %3238 = vmatmul.msk.bf16.gmra.mxu0 %vm315_vm0, %v4294_v10 }
  0x95   :  { %v421_v12 = vpop.f32.mrf.mxu0 }
  0x96   :  { %v422_v14 = vadd.f32 %v4779_v13, %v421_v12 }
  0x98   :  { %3239 = vmatmul.msk.bf16.gmra.mxu0 %vm315_vm0, %v4295_v11  ;;  %v581_v17 = vmax.f32 %v422_v14, 0.0  ;;  %v4315_v11 = vld [vmem:[%s5068_s0 + $0xe0] sm:$0xff] }
  0x99   :  { %3259 = vmatmul.msk.bf16.gmra.mxu3 %vm315_vm0, %v4315_v11 }
  0x9d   :  { %v423_v15 = vpop.f32.mrf.mxu0 }
  0x9e   :  { %v424_v16 = vadd.f32 %v4779_v13, %v423_v15  ;;  %v4302_v15 = vld [vmem:[%s5068_s0 + $0x78] sm:$0xff] }
  0xa0   :  { %v582_v18 = vmax.f32 %v424_v16, 0.0 }
  0xa2   :  { %v645_v19 = vadd.f32 %v582_v18, %v581_v17  ;;  %v4594_v17 = vpop.eup %4593 }
  0xa3   :  { %vm754_vm1 = vweird.f32 %v4594_v17 }
  0xa5   :  { %v426_v21 = vpop.f32.mrf.mxu0 }
  0xa6   :  { %v427_v22 = vadd.f32 %v4779_v13, %v426_v21 }
  0xa8   :  { %v583_v23 = vmax.f32 %v427_v22, 0.0  ;;  %3240 = vmatmul.msk.bf16.gmra.mxu0 %vm315_vm0, %v4296_v20  ;;  %v750_v22 = vmul.f32 64.0, %v4594_v17 }
  0xaa   :  { %v646_v24 = vadd.f32 %v645_v19, %v583_v23  ;;  %v4312_v19 = vld [vmem:[%s5068_s0 + $0xc8] sm:$0xff] }
  0xab   :  { %3256 = vmatmul.msk.bf16.gmra.mxu1 %vm315_vm0, %v4312_v19 }
  0xad   :  { %v428_v25 = vpop.f32.mrf.mxu0 }
  0xae   :  { %v429_v26 = vadd.f32 %v4779_v13, %v428_v25  ;;  %v751_v25 = vsub.f32 1.0, %v750_v22 }
  0xb0   :  { %v584_v27 = vmax.f32 %v429_v26, 0.0 }
  0xb2   :  { %v647_v28 = vadd.f32 %v646_v24, %v584_v27 }
  0xb5   :  { %v431_v30 = vpop.f32.mrf.mxu0 }
  0xb6   :  { %v432_v31 = vadd.f32 %v4779_v13, %v431_v30  ;;  %v4316_v30 = vld [vmem:[%s5068_s0 + $0xe8] sm:$0xff] }
  0xb7   :  { %3260 = vmatmul.msk.bf16.gmra.mxu3 %vm315_vm0, %v4316_v30 }
  0xb8   :  { %v585_v32 = vmax.f32 %v432_v31, 0.0  ;;  %3241 = vmatmul.msk.bf16.gmra.mxu0 %vm315_vm0, %v4297_v29  ;;  %v752_v31 = vmul.f32 %v4594_v17, %v751_v25 }
  0xba   :  { %v648_v33 = vadd.f32 %v647_v28, %v585_v32 }
  0xbd   :  { %v433_v34 = vpop.f32.mrf.mxu0 }
  0xbe   :  { %v434_v35 = vadd.f32 %v4779_v13, %v433_v34 }
  0xc0   :  { %v586_v36 = vmax.f32 %v434_v35, 0.0  ;;  %v4303_v35 = vld [vmem:[%s5068_s0 + $0x80] sm:$0xff] }
  0xc2   :  { %v649_v37 = vadd.f32 %v648_v33, %v586_v36  ;;  %v753_v36 = vadd.f32 %v4594_v17, %v752_v31 }
  0xc5   :  { %v436_v39 = vpop.f32.mrf.mxu0 }
  0xc6   :  { %v437_v40 = vadd.f32 %v4779_v13, %v436_v39  ;;  %v4313_v39 = vld [vmem:[%s5068_s0 + $0xd0] sm:$0xff] }
  0xc7   :  { %3257 = vmatmul.msk.bf16.gmra.mxu1 %vm315_vm0, %v4313_v39 }
  0xc8   :  { %v587_v41 = vmax.f32 %v437_v40, 0.0  ;;  %3242 = vmatmul.msk.bf16.gmra.mxu0 %vm315_vm0, %v4298_v38 }
  0xca   :  { %v650_v42 = vadd.f32 %v649_v37, %v587_v41 }
  0xcd   :  { %v438_v43 = vpop.f32.mrf.mxu0 }
  0xce   :  { %v439_v44 = vadd.f32 %v4779_v13, %v438_v43 }
  0xd0   :  { %v588_v45 = vmax.f32 %v439_v44, 0.0 }
  0xd2   :  { %v651_v46 = vadd.f32 %v650_v42, %v588_v45  ;;  %v4854_v42 = vsel %vm754_vm1, %v4594_v17, %v753_v36 }
  0xd4   :  { %v652_v14 = vrot.slane %v651_v46, 4 }
  0xd5   :  { %v441_v48 = vpop.f32.mrf.mxu0 }
  0xd6   :  { %v442_v49 = vadd.f32 %v4779_v13, %v441_v48  ;;  %v653_v20 = vadd.f32 %v652_v14, %v651_v46 }
  0xd8   :  { %3243 = vmatmul.msk.bf16.gmra.mxu0 %vm315_vm0, %v4299_v47  ;;  %v589_v52 = vmax.f32 %v442_v49, 0.0  ;;  %v654_v24 = vrot.slane %v653_v20, 2 }
  0xda   :  { %v655_v28 = vadd.f32 %v654_v24, %v653_v20 }
  0xdc   :  { %v656_v33 = vrot.slane %v655_v28, 1 }
  0xdd   :  { %v443_v50 = vpop.f32.mrf.mxu0 }
  0xde   :  { %v444_v51 = vadd.f32 %v4779_v13, %v443_v50  ;;  %v657_v40 = vadd.f32 %v656_v33, %v655_v28 }
  0xe0   :  { %v590_v53 = vmax.f32 %v444_v51, 0.0  ;;  %v756_v44 = vmul.f32 %v4854_v42, %v657_v40 }
  0xe2   :  { %v658_v54 = vadd.f32 %v590_v53, %v589_v52  ;;  %v764_v50 = vpack.c.bf16 %v756_v44, %v756_v44 }
  0xe5   :  { %v446_v56 = vpop.f32.mrf.mxu0 }
  0xe6   :  { %v447_v57 = vadd.f32 %v4779_v13, %v446_v56 }
  0xe8   :  { %v591_v58 = vmax.f32 %v447_v57, 0.0  ;;  %3244 = vmatmul.msk.bf16.gmra.mxu0 %vm315_vm0, %v4300_v55  ;;  %v944_v57 = vunpack.c.l.b16 %v764_v50 }
  0xea   :  { %v659_v59 = vadd.f32 %v658_v54, %v591_v58  ;;  %v4317_v54 = vld [vmem:[%s5068_s0 + $0xf0] sm:$0xff] }
  0xeb   :  { %3261 = vmatmul.msk.bf16.gmra.mxu3 %vm315_vm0, %v4317_v54 }
  0xed   :  { %v448_v60 = vpop.f32.mrf.mxu0 }
  0xee   :  { %v449_v61 = vadd.f32 %v4779_v13, %v448_v60 }
  0xf0   :  { %v592_v62 = vmax.f32 %v449_v61, 0.0 }
  0xf2   :  { %v660_v0 = vadd.f32 %v659_v59, %v592_v62  ;;  %v4304_v59 = vld [vmem:[%s5068_s0 + $0x88] sm:$0xff] }
  0xf5   :  { %v451_v2 = vpop.f32.mrf.mxu0 }
  0xf6   :  { %v452_v3 = vadd.f32 %v4779_v13, %v451_v2 }
  0xf8   :  { %v593_v5 = vmax.f32 %v452_v3, 0.0  ;;  %3245 = vmatmul.msk.bf16.gmra.mxu0 %vm315_vm0, %v4301_v1 }
  0xfa   :  { %v661_v6 = vadd.f32 %v660_v0, %v593_v5 }
  0xfb   :  { %3262 = vmatmul.msk.bf16.gmra.mxu3 %vm315_vm0, %v4318_v4 }
  0xfd   :  { %v453_v7 = vpop.f32.mrf.mxu0 }
  0xfe   :  { %v454_v8 = vadd.f32 %v4779_v13, %v453_v7 }
 0x100   :  { %v594_v10 = vmax.f32 %v454_v8, 0.0 }
 0x102   :  { %v662_v12 = vadd.f32 %v661_v6, %v594_v10  ;;  %v4305_v6 = vld [vmem:[%s5068_s0 + $0x90] sm:$0xff] }
 0x105   :  { %v456_v16 = vpop.f32.mrf.mxu0 }
 0x106   :  { %v457_v18 = vadd.f32 %v4779_v13, %v456_v16  ;;  %v4306_v16 = vld [vmem:[%s5068_s0 + $0x98] sm:$0xff] }
 0x108   :  { %v595_v21 = vmax.f32 %v457_v18, 0.0  ;;  %3246 = vmatmul.msk.bf16.gmra.mxu0 %vm315_vm0, %v4302_v15 }
 0x10a   :  { %v663_v23 = vadd.f32 %v662_v12, %v595_v21 }
 0x10d   :  { %v458_v26 = vpop.f32.mrf.mxu0 }
 0x10e   :  { %v459_v27 = vadd.f32 %v4779_v13, %v458_v26  ;;  %v4307_v26 = vld [vmem:[%s5068_s0 + $0xa0] sm:$0xff] }
 0x110   :  { %v596_v29 = vmax.f32 %v459_v27, 0.0 }
 0x112   :  { %v664_v32 = vadd.f32 %v663_v23, %v596_v29 }
 0x114   :  { %v665_v34 = vrot.slane %v664_v32, 4 }
 0x115   :  { %v461_v37 = vpop.f32.mrf.mxu0 }
 0x116   :  { %v666_v38 = vadd.f32 %v665_v34, %v664_v32  ;;  %v462_v46 = vadd.f32 %v4779_v13, %v461_v37 }
 0x118   :  { %v667_v41 = vrot.slane %v666_v38, 2  ;;  %3247 = vmatmul.msk.bf16.gmra.mxu0 %vm315_vm0, %v4303_v35  ;;  %v597_v52 = vmax.f32 %v462_v46, 0.0 }
 0x11a   :  { %v668_v43 = vadd.f32 %v667_v41, %v666_v38 }
 0x11c   :  { %v669_v45 = vrot.slane %v668_v43, 1 }
 0x11d   :  { %v463_v47 = vpop.f32.mrf.mxu0 }
 0x11e   :  { %v670_v48 = vadd.f32 %v669_v45, %v668_v43  ;;  %v464_v49 = vadd.f32 %v4779_v13, %v463_v47  ;;  %v4308_v43 = vld [vmem:[%s5068_s0 + $0xa8] sm:$0xff] }
 0x120   :  { %v757_v51 = vmul.f32 %v4854_v42, %v670_v48  ;;  %v598_v53 = vmax.f32 %v464_v49, 0.0 }
 0x122   :  { %v765_v55 = vpack.c.bf16 %v757_v51, %v757_v51  ;;  %v671_v56 = vadd.f32 %v598_v53, %v597_v52  ;;  %v4309_v53 = vld [vmem:[%s5068_s0 + $0xb0] sm:$0xff] }
 0x124   :  { %v945_v58 = vunpack.c.l.b16 %v765_v55 }
 0x125   :  { %v466_v60 = vpop.f32.mrf.mxu0 }
 0x126   :  { %v953_v61 = vsel %vm952_vm2, %v945_v58, %v944_v57  ;;  %v467_v62 = vadd.f32 %v4779_v13, %v466_v60 }
 0x128   :  { %v599_v63 = vmax.f32 %v467_v62, 0.0  ;;  %3248 = vmatmul.msk.bf16.gmra.mxu0 %vm315_vm0, %v4304_v59  ;;  %v4310_v62 = vld [vmem:[%s5068_s0 + $0xb8] sm:$0xff] }
 0x12a   :  { %v672_v0 = vadd.f32 %v671_v56, %v599_v63 }
 0x12d   :  { %v468_v1 = vpop.f32.mrf.mxu0 }
 0x12e   :  { %v469_v2 = vadd.f32 %v4779_v13, %v468_v1 }
 0x130   :  { %v600_v3 = vmax.f32 %v469_v2, 0.0 }
 0x132   :  { %v673_v5 = vadd.f32 %v672_v0, %v600_v3 }
 0x135   :  { %v471_v7 = vpop.f32.mrf.mxu0 }
 0x136   :  { %v472_v8 = vadd.f32 %v4779_v13, %v471_v7 }
 0x138   :  { %v601_v9 = vmax.f32 %v472_v8, 0.0  ;;  %3249 = vmatmul.msk.bf16.gmra.mxu0 %vm315_vm0, %v4305_v6 }
 0x13a   :  { %v674_v10 = vadd.f32 %v673_v5, %v601_v9 }
 0x13d   :  { %v473_v11 = vpop.f32.mrf.mxu0 }
 0x13e   :  { %v474_v12 = vadd.f32 %v4779_v13, %v473_v11 }
 0x140   :  { %v602_v14 = vmax.f32 %v474_v12, 0.0 }
 0x142   :  { %v675_v15 = vadd.f32 %v674_v10, %v602_v14 }
 0x145   :  { %v476_v17 = vpop.f32.mrf.mxu0 }
 0x146   :  { %v477_v18 = vadd.f32 %v4779_v13, %v476_v17 }
 0x148   :  { %v603_v19 = vmax.f32 %v477_v18, 0.0  ;;  %3250 = vmatmul.msk.bf16.gmra.mxu0 %vm315_vm0, %v4306_v16 }
 0x14a   :  { %v676_v20 = vadd.f32 %v675_v15, %v603_v19  ;;  %v4912_v15 = vpop.f32.mrf.mxu3 }
 0x14d   :  { %v478_v21 = vpop.f32.mrf.mxu0 }
 0x14e   :  { %v479_v22 = vadd.f32 %v4779_v13, %v478_v21 }
 0x150   :  { %v604_v23 = vmax.f32 %v479_v22, 0.0 }
 0x152   :  { %v677_v24 = vadd.f32 %v676_v20, %v604_v23 }
 0x154   :  { %v678_v25 = vrot.slane %v677_v24, 4 }
 0x155   :  { %v481_v27 = vpop.f32.mrf.mxu0 }
 0x156   :  { %v679_v28 = vadd.f32 %v678_v25, %v677_v24  ;;  %v482_v32 = vadd.f32 %v4779_v13, %v481_v27  ;;  %v4918_v27 = vpop.f32.mrf.mxu3 }
 0x158   :  { %v680_v29 = vrot.slane %v679_v28, 2  ;;  %3251 = vmatmul.msk.bf16.gmra.mxu0 %vm315_vm0, %v4307_v26  ;;  %v605_v37 = vmax.f32 %v482_v32, 0.0 }
 0x15a   :  { %v681_v30 = vadd.f32 %v680_v29, %v679_v28 }
 0x15c   :  { %v682_v31 = vrot.slane %v681_v30, 1 }
 0x15d   :  { %v483_v33 = vpop.f32.mrf.mxu0 }
 0x15e   :  { %v683_v34 = vadd.f32 %v682_v31, %v681_v30  ;;  %v484_v35 = vadd.f32 %v4779_v13, %v483_v33  ;;  %v4922_v33 = vpop.f32.mrf.mxu3 }
 0x160   :  { %v758_v36 = vmul.f32 %v4854_v42, %v683_v34  ;;  %v606_v38 = vmax.f32 %v484_v35, 0.0 }
 0x162   :  { %v766_v39 = vpack.c.bf16 %v758_v36, %v758_v36  ;;  %v684_v40 = vadd.f32 %v606_v38, %v605_v37 }
 0x164   :  { %v946_v41 = vunpack.c.l.b16 %v766_v39  ;;  %v541_v39 = vpop.f32.mrf.mxu1 }
 0x165   :  { %v486_v44 = vpop.f32.mrf.mxu0 }
 0x166   :  { %v955_v45 = vsel %vm954_vm3, %v946_v41, %v953_v61  ;;  %v487_v46 = vadd.f32 %v4779_v13, %v486_v44 }
 0x168   :  { %v607_v47 = vmax.f32 %v487_v46, 0.0  ;;  %3252 = vmatmul.msk.bf16.gmra.mxu0 %vm315_vm0, %v4308_v43 }
 0x16a   :  { %v685_v48 = vadd.f32 %v684_v40, %v607_v47  ;;  %v4925_v40 = vpop.f32.mrf.mxu3 }
 0x16c   :  { %v4928_v47 = vpop.f32.mrf.mxu1 }
 0x16d   :  { %v488_v49 = vpop.f32.mrf.mxu0 }
 0x16e   :  { %v489_v50 = vadd.f32 %v4779_v13, %v488_v49 }
 0x170   :  { %v608_v51 = vmax.f32 %v489_v50, 0.0 }
 0x172   :  { %v686_v52 = vadd.f32 %v685_v48, %v608_v51  ;;  %v4930_v48 = vpop.f32.mrf.mxu3 }
 0x175   :  { %v491_v54 = vpop.f32.mrf.mxu0 }
 0x176   :  { %v492_v55 = vadd.f32 %v4779_v13, %v491_v54 }
 0x178   :  { %v609_v56 = vmax.f32 %v492_v55, 0.0  ;;  %3253 = vmatmul.msk.bf16.gmra.mxu0 %vm315_vm0, %v4309_v53  ;;  %v4933_v53 = vpop.f32.mrf.mxu1 }
 0x17a   :  { %v687_v57 = vadd.f32 %v686_v52, %v609_v56  ;;  %v4935_v55 = vpop.f32.mrf.mxu3 }
 0x17d   :  { %v493_v58 = vpop.f32.mrf.mxu0 }
 0x17e   :  { %v494_v59 = vadd.f32 %v4779_v13, %v493_v58  ;;  %v4442_v58 = vld [vmem:[#allocation2 + $0x3bc] sm:$0xf0] }
 0x180   :  { %v610_v60 = vmax.f32 %v494_v59, 0.0  ;;  %v4434_v59 = vld [vmem:[#allocation2 + $0x384] sm:$0xf] }
 0x182   :  { %v688_v61 = vadd.f32 %v687_v57, %v610_v60  ;;  %v3713_v57 = vld [vmem:[#allocation2 + $0x380] sm:$0xf] }
 0x183   :  { %v3714_v60 = vor.u32 %v4442_v58, %v3713_v57  ;;  %v3457_v57 = vld [vmem:[#allocation2 + $0x180] sm:$0xf] }
 0x184   :  { %v4378_v58 = vld [vmem:[#allocation2 + $0x1bc] sm:$0xf0] }
 0x185   :  { %v496_v63 = vpop.f32.mrf.mxu0  ;;  %1608 = vmatpush.bf16.msrb.mxu1 %v3714_v60  ;;  %v3459_v60 = vld [vmem:[#allocation2 + $0x1c0] sm:$0xf0] }
 0x186   :  { %v497_v0 = vadd.f32 %v4779_v13, %v496_v63  ;;  %v4443_v63 = vld [vmem:[#allocation2 + $0x3c4] sm:$0xf0] }
 0x188   :  { %v611_v1 = vmax.f32 %v497_v0, 0.0  ;;  %3254 = vmatmul.msk.bf16.gmra.mxu0 %vm315_vm0, %v4310_v62  ;;  %v3721_v62 = vld [vmem:[#allocation2 + $0x388] sm:$0xf] }
 0x18a   :  { %v689_v2 = vadd.f32 %v688_v61, %v611_v1  ;;  %v3715_v61 = vld [vmem:[#allocation2 + $0x3c0] sm:$0xf0] }
 0x18b   :  { %v3718_v1 = vor.u32 %v4434_v59, %v3715_v61  ;;  %v3458_v59 = vor.u32 %v4378_v58, %v3457_v57  ;;  %v3465_v61 = vld [vmem:[#allocation2 + $0x188] sm:$0xf] }
 0x18d   :  { %v498_v3 = vpop.f32.mrf.mxu0  ;;  %1621 = vmatpush.bf16.msra.mxu2 %v3718_v1 }
 0x18e   :  { %v499_v4 = vadd.f32 %v4779_v13, %v498_v3 }
 0x190   :  { %v612_v5 = vmax.f32 %v499_v4, 0.0  ;;  %v3649_v4 = vld [vmem:[#allocation2 + $0x300] sm:$0xf] }
 0x192   :  { %v690_v6 = vadd.f32 %v689_v2, %v612_v5  ;;  %v3722_v2 = vor.u32 %v4443_v63, %v3721_v62  ;;  %v4426_v5 = vld [vmem:[#allocation2 + $0x33c] sm:$0xf0]  ;;  %v4379_v62 = vld [vmem:[#allocation2 + $0x1c4] sm:$0xf0] }
 0x193   :  { %v3466_v1 = vor.u32 %v4379_v62, %v3465_v61  ;;  %v4435_v61 = vld [vmem:[#allocation2 + $0x38c] sm:$0xf] }
 0x194   :  { %v691_v7 = vrot.slane %v690_v6, 4  ;;  %1634 = vmatpush.bf16.msrb.mxu3 %v3722_v2  ;;  %v3723_v62 = vld [vmem:[#allocation2 + $0x3c8] sm:$0xf0] }
 0x195   :  { %v501_v8 = vpop.f32.mrf.mxu0 }
 0x196   :  { %v692_v9 = vadd.f32 %v691_v7, %v690_v6  ;;  %v502_v14 = vadd.f32 %v4779_v13, %v501_v8  ;;  %v4418_v6 = vld [vmem:[#allocation2 + $0x304] sm:$0xf]  ;;  %v3650_v7 = vor.u32 %v4426_v5, %v3649_v4 }
 0x197   :  { %v3651_v8 = vld [vmem:[#allocation2 + $0x340] sm:$0xf0] }
 0x198   :  { %v693_v10 = vrot.slane %v692_v9, 2  ;;  %v613_v20 = vmax.f32 %v502_v14, 0.0  ;;  %1609 = vmatpush.bf16.msrb.mxu1 %v3650_v7  ;;  %v3393_v7 = vld [vmem:[#allocation2 + $0x100] sm:$0xf] }
 0x19a   :  { %v694_v11 = vadd.f32 %v693_v10, %v692_v9  ;;  %v3657_v9 = vld [vmem:[#allocation2 + $0x308] sm:$0xf] }
 0x19b   :  { %v4427_v10 = vld [vmem:[#allocation2 + $0x344] sm:$0xf0] }
 0x19c   :  { %v695_v12 = vrot.slane %v694_v11, 1  ;;  %v3658_v14 = vor.u32 %v4427_v10, %v3657_v9  ;;  %v4354_v9 = vld [vmem:[#allocation2 + $0x104] sm:$0xf] }
 0x19d   :  { %v503_v16 = vpop.f32.mrf.mxu0 }
 0x19e   :  { %v696_v17 = vadd.f32 %v695_v12, %v694_v11  ;;  %v504_v18 = vadd.f32 %v4779_v13, %v503_v16  ;;  %v3654_v12 = vor.u32 %v4418_v6, %v3651_v8  ;;  %1635 = vmatpush.bf16.msrb.mxu3 %v3658_v14  ;;  %v4362_v8 = vld [vmem:[#allocation2 + $0x13c] sm:$0xf0]  ;;  %v4363_v14 = vld [vmem:[#allocation2 + $0x144] sm:$0xf0] }
 0x19f   :  { %v3394_v10 = vor.u32 %v4362_v8, %v3393_v7  ;;  %v4419_v7 = vld [vmem:[#allocation2 + $0x30c] sm:$0xf] }
 0x1a0   :  { %v759_v19 = vmul.f32 %v4854_v42, %v696_v17  ;;  %v614_v21 = vmax.f32 %v504_v18, 0.0  ;;  %1622 = vmatpush.bf16.msra.mxu2 %v3654_v12  ;;  %v3585_v18 = vld [vmem:[#allocation2 + $0x280] sm:$0xf]  ;;  %v3401_v12 = vld [vmem:[#allocation2 + $0x108] sm:$0xf] }
 0x1a1   :  { %v3659_v8 = vld [vmem:[#allocation2 + $0x348] sm:$0xf0] }
 0x1a2   :  { %v767_v22 = vpack.c.bf16 %v759_v19, %v759_v19  ;;  %v697_v23 = vadd.f32 %v614_v21, %v613_v20  ;;  %v4410_v19 = vld [vmem:[#allocation2 + $0x2bc] sm:$0xf0]  ;;  %v4402_v20 = vld [vmem:[#allocation2 + $0x284] sm:$0xf]  ;;  %v4940_v21 = vpop.f32.mrf.mxu1 }
 0x1a4   :  { %v947_v24 = vunpack.c.l.b16 %v767_v22  ;;  %v3586_v22 = vor.u32 %v4410_v19, %v3585_v18  ;;  %v3402_v19 = vor.u32 %v4363_v14, %v3401_v12  ;;  %v3662_v14 = vor.u32 %v4419_v7, %v3659_v8 }
 0x1a5   :  { %v506_v25 = vpop.f32.mrf.mxu0 }
 0x1a6   :  { %v4916_v26 = vsel %vm956_vm4, %v947_v24, %v955_v45  ;;  %v507_v28 = vadd.f32 %v4779_v13, %v506_v25  ;;  %v3593_v24 = vld [vmem:[#allocation2 + $0x288] sm:$0xf]  ;;  %1610 = vmatpush.bf16.msrb.mxu1 %v3586_v22  ;;  %v549_v22 = vadd.f32 %v4779_v13, %v4940_v21 }
 0x1a7   :  { %v4411_v25 = vld [vmem:[#allocation2 + $0x2c4] sm:$0xf0] }
 0x1a8   :  { %v615_v29 = vmax.f32 %v507_v28, 0.0  ;;  %v4942_v28 = vpop.f32.mrf.mxu3  ;;  %v4347_v21 = vld [vmem:[#allocation2 + $0xc4] sm:$0xf0] }
 0x1a9   :  { %v572_v58 = vadd.f32 %v4779_v13, %v4942_v28 }
 0x1aa   :  { %v698_v30 = vadd.f32 %v697_v23, %v615_v29  ;;  %v3587_v23 = vld [vmem:[#allocation2 + $0x2c0] sm:$0xf0]  ;;  %v551_v4 = vpop.f32.mrf.mxu1 }
 0x1ab   :  { %v641_v12 = vmax.f32 %v572_v58, 0.0 }
 0x1ad   :  { %v508_v31 = vpop.f32.mrf.mxu0 }
 0x1ae   :  { %v509_v32 = vadd.f32 %v4779_v13, %v508_v31  ;;  %v3594_v31 = vor.u32 %v4411_v25, %v3593_v24 }
 0x1b0   :  { %v616_v34 = vmax.f32 %v509_v32, 0.0  ;;  %v4945_v32 = vadd.f32 %v4779_v13, %v541_v39  ;;  %1636 = vmatpush.bf16.msrb.mxu3 %v3594_v31  ;;  %v4959_v6 = vpop.f32.mrf.mxu3 }
 0x1b2   :  { %v699_v35 = vadd.f32 %v698_v30, %v616_v34  ;;  %v3590_v30 = vor.u32 %v4402_v20, %v3587_v23  ;;  %v629_v39 = vmax.f32 %v4945_v32, 0.0  ;;  %v569_v23 = vadd.f32 %v4779_v13, %v4935_v55 }
 0x1b4   :  { %1623 = vmatpush.bf16.msra.mxu2 %v3590_v30  ;;  %v4338_v30 = vld [vmem:[#allocation2 + $0x84] sm:$0xf] }
 0x1b5   :  { %v511_v36 = vpop.f32.mrf.mxu0 }
 0x1b6   :  { %v512_v37 = vadd.f32 %v4779_v13, %v511_v36  ;;  %v4394_v36 = vld [vmem:[#allocation2 + $0x23c] sm:$0xf0] }
 0x1b8   :  { %v617_v38 = vmax.f32 %v512_v37, 0.0  ;;  %v4386_v37 = vld [vmem:[#allocation2 + $0x204] sm:$0xf] }
 0x1ba   :  { %v700_v41 = vadd.f32 %v699_v35, %v617_v38  ;;  %v3521_v35 = vld [vmem:[#allocation2 + $0x200] sm:$0xf] }
 0x1bb   :  { %v3522_v38 = vor.u32 %v4394_v36, %v3521_v35  ;;  %v3337_v35 = vld [vmem:[#allocation2 + $0x88] sm:$0xf] }
 0x1bd   :  { %v513_v43 = vpop.f32.mrf.mxu0  ;;  %1611 = vmatpush.bf16.msrb.mxu1 %v3522_v38  ;;  %v3338_v38 = vor.u32 %v4347_v21, %v3337_v35  ;;  %v4412_v21 = vld [vmem:[#allocation2 + $0x2cc] sm:$0xf0] }
 0x1be   :  { %v514_v44 = vadd.f32 %v4779_v13, %v513_v43  ;;  %v3529_v43 = vld [vmem:[#allocation2 + $0x208] sm:$0xf] }
 0x1c0   :  { %v618_v45 = vmax.f32 %v514_v44, 0.0  ;;  %v4395_v44 = vld [vmem:[#allocation2 + $0x244] sm:$0xf0] }
 0x1c1   :  { %1612 = vmatpush.bf16.msrb.mxu1 %v3458_v59 }
 0x1c2   :  { %v701_v46 = vadd.f32 %v700_v41, %v618_v45  ;;  %v3523_v41 = vld [vmem:[#allocation2 + $0x240] sm:$0xf0]  ;;  %v544_v45 = vadd.f32 %v4779_v13, %v4928_v47 }
 0x1c3   :  { %v4370_v47 = vld [vmem:[#allocation2 + $0x184] sm:$0xf] }
 0x1c4   :  { %v630_v63 = vmax.f32 %v544_v45, 0.0  ;;  %v4322_v45 = vld [vmem:[#allocation2 + $0x4] sm:$0xf] }
 0x1c5   :  { %v516_v49 = vpop.f32.mrf.mxu0  ;;  %1613 = vmatpush.bf16.msrb.mxu1 %v3394_v10 }
 0x1c6   :  { %v517_v50 = vadd.f32 %v4779_v13, %v516_v49  ;;  %v3526_v49 = vor.u32 %v4386_v37, %v3523_v41  ;;  %v723_v31 = vadd.f32 %v630_v63, %v629_v39  ;;  %v632_v41 = vmax.f32 %v549_v22, 0.0  ;;  %v3729_v63 = vld [vmem:[#allocation2 + $0x390] sm:$0xf] }
 0x1c8   :  { %v619_v51 = vmax.f32 %v517_v50, 0.0  ;;  %v3530_v50 = vor.u32 %v4395_v44, %v3529_v43  ;;  %1624 = vmatpush.bf16.msra.mxu2 %v3526_v49  ;;  %v640_v43 = vmax.f32 %v569_v23, 0.0  ;;  %v4330_v44 = vld [vmem:[#allocation2 + $0x3c] sm:$0xf0]  ;;  %v552_v49 = vadd.f32 %v4779_v13, %v551_v4 }
 0x1ca   :  { %v702_v52 = vadd.f32 %v701_v46, %v619_v51  ;;  %v562_v51 = vadd.f32 %v4779_v13, %v4922_v33  ;;  %1637 = vmatpush.bf16.msrb.mxu3 %v3530_v50  ;;  %v3462_v33 = vor.u32 %v4370_v47, %v3459_v60  ;;  %v553_v50 = vpop.f32.mrf.mxu1  ;;  %v576_v47 = vpop.f32.mrf.mxu3  ;;  %v633_v10 = vmax.f32 %v552_v49, 0.0 }
 0x1cc   :  { %v637_v2 = vmax.f32 %v562_v51, 0.0  ;;  %1625 = vmatpush.bf16.msra.mxu2 %v3462_v33  ;;  %v3267_v51 = vld [vmem:[#allocation2 + $0x40] sm:$0xf0]  ;;  %v3726_v33 = vor.u32 %v4435_v61, %v3723_v62  ;;  %v4371_v61 = vld [vmem:[#allocation2 + $0x18c] sm:$0xf] }
 0x1cd   :  { %v518_v54 = vpop.f32.mrf.mxu0  ;;  %v3270_v59 = vor.u32 %v4322_v45, %v3267_v51  ;;  %v3531_v45 = vld [vmem:[#allocation2 + $0x248] sm:$0xf0]  ;;  %v4396_v51 = vld [vmem:[#allocation2 + $0x24c] sm:$0xf0] }
 0x1ce   :  { %v519_v56 = vadd.f32 %v4779_v13, %v518_v54  ;;  %1638 = vmatpush.bf16.msrb.mxu3 %v3466_v1  ;;  %v4444_v1 = vld [vmem:[#allocation2 + $0x3cc] sm:$0xf0]  ;;  %v3467_v62 = vld [vmem:[#allocation2 + $0x1c8] sm:$0xf0] }
 0x1cf   :  { %v3730_v4 = vor.u32 %v4444_v1, %v3729_v63  ;;  %v3473_v63 = vld [vmem:[#allocation2 + $0x190] sm:$0xf]  ;;  %v3470_v1 = vor.u32 %v4371_v61, %v3467_v62 }
 0x1d0   :  { %v620_v0 = vmax.f32 %v519_v56, 0.0 }
 0x1d2   :  { %v703_v3 = vadd.f32 %v702_v52, %v620_v0  ;;  %v564_v52 = vadd.f32 %v4779_v13, %v4925_v40  ;;  %v547_v40 = vadd.f32 %v4779_v13, %v4933_v53  ;;  %v567_v53 = vadd.f32 %v4779_v13, %v4930_v48  ;;  %1639 = vmatpush.bf16.msrb.mxu3 %v3402_v19  ;;  %v3329_v48 = vld [vmem:[#allocation2 + $0x80] sm:$0xf] }
 0x1d4   :  { %v704_v11 = vrot.slane %v703_v3, 4  ;;  %v631_v20 = vmax.f32 %v547_v40, 0.0  ;;  %v639_v37 = vmax.f32 %v567_v53, 0.0  ;;  %v4436_v40 = vld [vmem:[#allocation2 + $0x394] sm:$0xf] }
 0x1d5   :  { %v4938_v16 = vpop.f32.mrf.mxu0  ;;  %v4428_v53 = vld [vmem:[#allocation2 + $0x34c] sm:$0xf0] }
 0x1d6   :  { %v705_v17 = vadd.f32 %v704_v11, %v703_v3  ;;  %v638_v3 = vmax.f32 %v564_v52, 0.0  ;;  %v3395_v11 = vld [vmem:[#allocation2 + $0x140] sm:$0xf0]  ;;  %1640 = vmatpush.bf16.msrb.mxu3 %v3338_v38  ;;  %v3273_v52 = vld [vmem:[#allocation2 + $0x8] sm:$0xf] }
 0x1d7   :  { %v3398_v18 = vor.u32 %v4354_v9, %v3395_v11  ;;  %v3665_v9 = vld [vmem:[#allocation2 + $0x310] sm:$0xf] }
 0x1d8   :  { %v706_v29 = vrot.slane %v705_v17, 2  ;;  %v736_v36 = vadd.f32 %v638_v3, %v637_v2  ;;  %v3731_v2 = vld [vmem:[#allocation2 + $0x3d0] sm:$0xf0]  ;;  %v554_v3 = vadd.f32 %v4779_v13, %v553_v50  ;;  %v3666_v19 = vor.u32 %v4428_v53, %v3665_v9 }
 0x1d9   :  { %1626 = vmatpush.bf16.msra.mxu2 %v3398_v18  ;;  %v574_v18 = vadd.f32 %v4779_v13, %v4959_v6 }
 0x1da   :  { %v707_v34 = vadd.f32 %v706_v29, %v705_v17  ;;  %v4346_v29 = vld [vmem:[#allocation2 + $0xbc] sm:$0xf0]  ;;  %v737_v57 = vadd.f32 %v736_v36, %v639_v37  ;;  %v634_v22 = vmax.f32 %v554_v3, 0.0  ;;  %v4404_v36 = vld [vmem:[#allocation2 + $0x294] sm:$0xf] }
 0x1db   :  { %v3330_v32 = vor.u32 %v4346_v29, %v3329_v48  ;;  %v557_v48 = vadd.f32 %v4779_v13, %v4912_v15  ;;  %v4403_v29 = vld [vmem:[#allocation2 + $0x28c] sm:$0xf]  ;;  %v3603_v37 = vld [vmem:[#allocation2 + $0x2d0] sm:$0xf0]  ;;  %v642_v6 = vmax.f32 %v574_v18, 0.0  ;;  %v559_v15 = vadd.f32 %v4779_v13, %v4918_v27 }
 0x1dc   :  { %v708_v46 = vrot.slane %v707_v34, 1  ;;  %v738_v11 = vadd.f32 %v737_v57, %v640_v43  ;;  %v3606_v43 = vor.u32 %v4404_v36, %v3603_v37  ;;  %v3475_v3 = vld [vmem:[#allocation2 + $0x1d0] sm:$0xf0]  ;;  %v4364_v18 = vld [vmem:[#allocation2 + $0x14c] sm:$0xf0] }
 0x1dd   :  { %v4954_v54 = vpop.f32.mrf.mxu0  ;;  %1614 = vmatpush.bf16.msrb.mxu1 %v3330_v32  ;;  %v635_v49 = vmax.f32 %v557_v48, 0.0  ;;  %v3411_v48 = vld [vmem:[#allocation2 + $0x150] sm:$0xf0]  ;;  %v4348_v36 = vld [vmem:[#allocation2 + $0xcc] sm:$0xf0] }
 0x1de   :  { %v709_v56 = vadd.f32 %v708_v46, %v707_v34  ;;  %v3331_v34 = vld [vmem:[#allocation2 + $0xc0] sm:$0xf0]  ;;  %v724_v46 = vadd.f32 %v723_v31, %v631_v20  ;;  %v3667_v20 = vld [vmem:[#allocation2 + $0x350] sm:$0xf0]  ;;  %v3601_v31 = vld [vmem:[#allocation2 + $0x290] sm:$0xf]  ;;  %v524_v9 = vadd.f32 %v4779_v13, %v4954_v54 }
 0x1df   :  { %v3334_v55 = vor.u32 %v4338_v30, %v3331_v34  ;;  %v3595_v30 = vld [vmem:[#allocation2 + $0x2c8] sm:$0xf0]  ;;  %v739_v34 = vadd.f32 %v738_v11, %v641_v12  ;;  %v3409_v12 = vld [vmem:[#allocation2 + $0x110] sm:$0xf]  ;;  %v4340_v37 = vld [vmem:[#allocation2 + $0x94] sm:$0xf] }
 0x1e0   :  { %v760_v0 = vmul.f32 %v4854_v42, %v709_v56  ;;  %v4331_v56 = vld [vmem:[#allocation2 + $0x44] sm:$0xf0]  ;;  %v725_v28 = vadd.f32 %v724_v46, %v632_v41  ;;  %v3598_v35 = vor.u32 %v4403_v29, %v3595_v30  ;;  %v3602_v41 = vor.u32 %v4412_v21, %v3601_v31  ;;  %v3537_v46 = vld [vmem:[#allocation2 + $0x210] sm:$0xf]  ;;  %v3403_v11 = vld [vmem:[#allocation2 + $0x148] sm:$0xf0] }
 0x1e1   :  { %1627 = vmatpush.bf16.msra.mxu2 %v3334_v55  ;;  %v3274_v60 = vor.u32 %v4331_v56, %v3273_v52  ;;  %v577_v55 = vadd.f32 %v4779_v13, %v576_v47  ;;  %v4388_v52 = vld [vmem:[#allocation2 + $0x214] sm:$0xf]  ;;  %v740_v56 = vadd.f32 %v739_v34, %v642_v6  ;;  %v3538_v47 = vor.u32 %v4396_v51, %v3537_v46  ;;  %v4339_v31 = vld [vmem:[#allocation2 + $0x8c] sm:$0xf] }
 0x1e2   :  { %v768_v5 = vpack.c.bf16 %v760_v0, %v760_v0  ;;  %v726_v32 = vadd.f32 %v725_v28, %v633_v10  ;;  %v4355_v10 = vld [vmem:[#allocation2 + $0x10c] sm:$0xf]  ;;  %v622_v54 = vmax.f32 %v524_v9, 0.0 }
 0x1e3   :  { %1641 = vmatpush.bf16.msrb.mxu3 %v3274_v60  ;;  %v643_v57 = vmax.f32 %v577_v55, 0.0  ;;  %v636_v60 = vmax.f32 %v559_v15, 0.0 }
 0x1e4   :  { %v948_v17 = vunpack.c.l.b16 %v768_v5  ;;  %v3734_v5 = vor.u32 %v4436_v40, %v3731_v2  ;;  %v727_v50 = vadd.f32 %v726_v32, %v634_v22  ;;  %v4380_v40 = vld [vmem:[#allocation2 + $0x1cc] sm:$0xf0]  ;;  %v4372_v2 = vld [vmem:[#allocation2 + $0x194] sm:$0xf] }
 0x1e5   :  { %v4967_v24 = vpop.f32.mrf.mxu0  ;;  %1628 = vmatpush.bf16.msra.mxu2 %v3270_v59  ;;  %v3539_v59 = vld [vmem:[#allocation2 + $0x250] sm:$0xf0]  ;;  %v3474_v7 = vor.u32 %v4380_v40, %v3473_v63  ;;  %v3478_v8 = vor.u32 %v4372_v2, %v3475_v3  ;;  %v3345_v32 = vld [vmem:[#allocation2 + $0x90] sm:$0xf] }
 0x1e6   :  { %v4971_v25 = vsel %vm958_vm5, %v948_v17, %v4916_v26  ;;  %v3265_v26 = vld [vmem:[#allocation2] sm:$0xf]  ;;  %v4420_v17 = vld [vmem:[#allocation2 + $0x314] sm:$0xf]  ;;  %v3542_v27 = vor.u32 %v4388_v52, %v3539_v59  ;;  %v527_v53 = vadd.f32 %v4779_v13, %v4967_v24  ;;  %v3281_v52 = vld [vmem:[#allocation2 + $0x10] sm:$0xf] }
 0x1e7   :  { %v3266_v39 = vor.u32 %v4330_v44, %v3265_v26  ;;  %1673 = vmatpush.bf16.msra.mxu3 %v3734_v5  ;;  %v3670_v23 = vor.u32 %v4420_v17, %v3667_v20  ;;  %v578_v26 = vpop.f32.mrf.mxu3  ;;  %v4387_v44 = vld [vmem:[#allocation2 + $0x20c] sm:$0xf]  ;;  %v3406_v17 = vor.u32 %v4355_v10, %v3403_v11  ;;  %v3283_v59 = vld [vmem:[#allocation2 + $0x50] sm:$0xf0] }
 0x1e8   :  { %v579_v58 = vadd.f32 %v4779_v13, %v578_v26  ;;  %v623_v24 = vmax.f32 %v527_v53, 0.0 }
 0x1e9   :  { %1615 = vmatpush.bf16.msrb.mxu1 %v3266_v39  ;;  %1660 = vmatpush.bf16.msrb.mxu2 %v3730_v4  ;;  %v3534_v39 = vor.u32 %v4387_v44, %v3531_v45  ;;  %v741_v4 = vadd.f32 %v740_v56, %v643_v57  ;;  %v4595_v44 = vld [vmem:[%s5070_s2] ss:$0 sm:$0xff]  ;;  %v4332_v56 = vld [vmem:[#allocation2 + $0x4c] sm:$0xf0] }
 0x1ea   :  { %v644_v5 = vmax.f32 %v579_v58, 0.0  ;;  %v3282_v58 = vor.u32 %v4332_v56, %v3281_v52  ;;  %v4413_v52 = vld [vmem:[#allocation2 + $0x2d4] sm:$0xf0]  ;;  %v4405_v56 = vld [vmem:[#allocation2 + $0x29c] sm:$0xf] }
 0x1eb   :  { %1674 = vmatpush.bf16.msra.mxu3 %v3670_v23  ;;  %v3410_v23 = vor.u32 %v4364_v18, %v3409_v12 }
 0x1ec   :  { %v742_v22 = vadd.f32 %v741_v4, %v644_v5 }
 0x1ed   :  { %v4976_v0 = vpop.f32.mrf.mxu0  ;;  %1647 = vmatpush.bf16.msra.mxu1 %v3726_v33  ;;  %1661 = vmatpush.bf16.msrb.mxu2 %v3666_v19  ;;  %v728_v33 = vadd.f32 %v727_v50, %v635_v49  ;;  %v4356_v19 = vld [vmem:[#allocation2 + $0x114] sm:$0xf] }
 0x1ee   :  { %v529_v29 = vadd.f32 %v4779_v13, %v4976_v0  ;;  %v3414_v30 = vor.u32 %v4356_v19, %v3411_v48  ;;  %v743_v55 = vrot.slane %v742_v22, 4  ;;  %v3347_v0 = vld [vmem:[#allocation2 + $0xd0] sm:$0xf0] }
 0x1ef   :  { %1675 = vmatpush.bf16.msra.mxu3 %v3606_v43  ;;  %v729_v20 = vadd.f32 %v728_v33, %v636_v60  ;;  %v3346_v43 = vor.u32 %v4348_v36, %v3345_v32  ;;  %v3350_v46 = vor.u32 %v4340_v37, %v3347_v0  ;;  %v3739_v37 = vld [vmem:[#allocation2 + $0x3d8] sm:$0xf0] }
 0x1f0   :  { %v624_v26 = vmax.f32 %v529_v29, 0.0  ;;  %v744_v60 = vadd.f32 %v743_v55, %v742_v22  ;;  %v4446_v55 = vld [vmem:[#allocation2 + $0x3dc] sm:$0xf0] }
 0x1f1   :  { %1648 = vmatpush.bf16.msra.mxu1 %v3662_v14  ;;  %1662 = vmatpush.bf16.msrb.mxu2 %v3602_v41  ;;  %v522_v14 = vadd.f32 %v4779_v13, %v4938_v16  ;;  %v3339_v16 = vld [vmem:[#allocation2 + $0xc8] sm:$0xf0]  ;;  %v730_v6 = vrot.slane %v729_v20, 4 }
 0x1f2   :  { %v3342_v21 = vor.u32 %v4339_v31, %v3339_v16  ;;  %v745_v2 = vrot.slane %v744_v60, 2 }
 0x1f3   :  { %1676 = vmatpush.bf16.msra.mxu3 %v3542_v27  ;;  %v621_v34 = vmax.f32 %v522_v14, 0.0  ;;  %v731_v57 = vadd.f32 %v730_v6, %v729_v20  ;;  %v3745_v6 = vld [vmem:[#allocation2 + $0x3a0] sm:$0xf] }
 0x1f5   :  { %v4984_v38 = vpop.f32.mrf.mxu0  ;;  %1649 = vmatpush.bf16.msra.mxu1 %v3598_v35  ;;  %1663 = vmatpush.bf16.msrb.mxu2 %v3538_v47  ;;  %v710_v15 = vadd.f32 %v622_v54, %v621_v34  ;;  %v4324_v47 = vld [vmem:[#allocation2 + $0x14] sm:$0xf]  ;;  %v3737_v34 = vld [vmem:[#allocation2 + $0x398] sm:$0xf] }
 0x1f6   :  { %v532_v35 = vadd.f32 %v4779_v13, %v4984_v38  ;;  %v4323_v13 = vld [vmem:[#allocation2 + $0xc] sm:$0xf]  ;;  %v3286_v62 = vor.u32 %v4324_v47, %v3283_v59  ;;  %v4414_v47 = vld [vmem:[#allocation2 + $0x2dc] sm:$0xf0] }
 0x1f7   :  { %1677 = vmatpush.bf16.msra.mxu3 %v3478_v8  ;;  %v3275_v38 = vld [vmem:[#allocation2 + $0x48] sm:$0xf0]  ;;  %v711_v49 = vadd.f32 %v710_v15, %v623_v24  ;;  %v746_v8 = vadd.f32 %v745_v2, %v744_v60  ;;  %v4445_v24 = vld [vmem:[#allocation2 + $0x3d4] sm:$0xf0] }
 0x1f8   :  { %v625_v50 = vmax.f32 %v532_v35, 0.0  ;;  %v3278_v51 = vor.u32 %v4323_v13, %v3275_v38  ;;  %v4437_v35 = vld [vmem:[#allocation2 + $0x39c] sm:$0xf]  ;;  %v3681_v38 = vld [vmem:[#allocation2 + $0x320] sm:$0xf] }
 0x1f9   :  { %1650 = vmatpush.bf16.msra.mxu1 %v3534_v39  ;;  %1664 = vmatpush.bf16.msrb.mxu2 %v3474_v7  ;;  %v712_v27 = vadd.f32 %v711_v49, %v624_v26  ;;  %v747_v12 = vrot.slane %v746_v8, 1  ;;  %v3742_v15 = vor.u32 %v4437_v35, %v3739_v37  ;;  %v3746_v26 = vor.u32 %v4446_v55, %v3745_v6  ;;  %v3675_v13 = vld [vmem:[#allocation2 + $0x358] sm:$0xf0]  ;;  %v4430_v49 = vld [vmem:[#allocation2 + $0x35c] sm:$0xf0] }
 0x1fa   :  { %v3289_v35 = vld [vmem:[#allocation2 + $0x18] sm:$0xf]  ;;  %v4325_v6 = vld [vmem:[#allocation2 + $0x1c] sm:$0xf] }
 0x1fb   :  { %1678 = vmatpush.bf16.msra.mxu3 %v3414_v30  ;;  %v713_v63 = vadd.f32 %v712_v27, %v625_v50  ;;  %v748_v18 = vadd.f32 %v747_v12, %v746_v8  ;;  %v3483_v8 = vld [vmem:[#allocation2 + $0x1d8] sm:$0xf0]  ;;  %v4333_v37 = vld [vmem:[#allocation2 + $0x54] sm:$0xf0] }
 0x1fc   :  { %v3291_v55 = vld [vmem:[#allocation2 + $0x58] sm:$0xf0] }
 0x1fd   :  { %v533_v28 = vpop.f32.mrf.mxu0  ;;  %1651 = vmatpush.bf16.msra.mxu1 %v3470_v1  ;;  %1665 = vmatpush.bf16.msrb.mxu2 %v3410_v23  ;;  %v732_v1 = vrot.slane %v731_v57, 2  ;;  %v763_v23 = vmul.f32 %v4854_v42, %v748_v18  ;;  %v4357_v18 = vld [vmem:[#allocation2 + $0x11c] sm:$0xf] }
 0x1fe   :  { %v534_v45 = vadd.f32 %v4595_v44, %v533_v28 }
 0x1ff   :  { %1679 = vmatpush.bf16.msra.mxu3 %v3350_v46  ;;  %v733_v7 = vadd.f32 %v732_v1, %v731_v57  ;;  %v771_v30 = vpack.c.bf16 %v763_v23, %v763_v23  ;;  %v4421_v46 = vld [vmem:[#allocation2 + $0x31c] sm:$0xf]  ;;  %v3553_v1 = vld [vmem:[#allocation2 + $0x220] sm:$0xf] }
 0x200   :  { %v626_v61 = vmax.f32 %v534_v45, 0.0  ;;  %v4429_v45 = vld [vmem:[#allocation2 + $0x354] sm:$0xf0]  ;;  %v3678_v50 = vor.u32 %v4421_v46, %v3675_v13  ;;  %v3611_v57 = vld [vmem:[#allocation2 + $0x2d8] sm:$0xf0] }
 0x201   :  { %1652 = vmatpush.bf16.msra.mxu1 %v3406_v17  ;;  %1666 = vmatpush.bf16.msrb.mxu2 %v3346_v43  ;;  %v734_v11 = vrot.slane %v733_v7, 1  ;;  %v3614_v60 = vor.u32 %v4405_v56, %v3611_v57  ;;  %v4439_v46 = vld [vmem:[#allocation2 + $0x3ac] sm:$0xf]  ;;  %v3689_v56 = vld [vmem:[#allocation2 + $0x328] sm:$0xf] }
 0x202   :  { %v714_v3 = vadd.f32 %v713_v63, %v626_v61  ;;  %v3545_v61 = vld [vmem:[#allocation2 + $0x218] sm:$0xf]  ;;  %v4389_v63 = vld [vmem:[#allocation2 + $0x21c] sm:$0xf]  ;;  %v3755_v13 = vld [vmem:[#allocation2 + $0x3e8] sm:$0xf0] }
 0x203   :  { %1680 = vmatpush.bf16.msra.mxu3 %v3286_v62  ;;  %v735_v17 = vadd.f32 %v734_v11, %v733_v7  ;;  %v4397_v62 = vld [vmem:[#allocation2 + $0x254] sm:$0xf0]  ;;  %v4373_v7 = vld [vmem:[#allocation2 + $0x19c] sm:$0xf]  ;;  %v4431_v57 = vld [vmem:[#allocation2 + $0x364] sm:$0xf0] }
 0x204   :  { %v3546_v2 = vor.u32 %v4397_v62, %v3545_v61  ;;  %v3486_v12 = vor.u32 %v4373_v7, %v3483_v8  ;;  %v3619_v62 = vld [vmem:[#allocation2 + $0x2e0] sm:$0xf0]  ;;  %v3561_v7 = vld [vmem:[#allocation2 + $0x228] sm:$0xf] }
 0x205   :  { %v536_v41 = vpop.f32.mrf.mxu0  ;;  %1653 = vmatpush.bf16.msra.mxu1 %v3342_v21  ;;  %1667 = vmatpush.bf16.msrb.mxu2 %v3282_v58  ;;  %v762_v22 = vmul.f32 %v4854_v42, %v735_v17  ;;  %v951_v21 = vunpack.c.l.b16 %v771_v30  ;;  %v3617_v58 = vld [vmem:[#allocation2 + $0x2a0] sm:$0xf]  ;;  %v4365_v17 = vld [vmem:[#allocation2 + $0x154] sm:$0xf0]  ;;  %v4399_v8 = vld [vmem:[#allocation2 + $0x264] sm:$0xf0] }
 0x206   :  { %v537_v39 = vadd.f32 %v4595_v44, %v536_v41  ;;  %v3618_v27 = vor.u32 %v4414_v47, %v3617_v58  ;;  %v4349_v30 = vld [vmem:[#allocation2 + $0xd4] sm:$0xf0]  ;;  %v4423_v58 = vld [vmem:[#allocation2 + $0x32c] sm:$0xf] }
 0x207   :  { %v770_v29 = vpack.c.bf16 %v762_v22, %v762_v22  ;;  %v4366_v22 = vld [vmem:[#allocation2 + $0x15c] sm:$0xf0]  ;;  %v3691_v47 = vld [vmem:[#allocation2 + $0x368] sm:$0xf0] }
 0x208   :  { %v627_v33 = vmax.f32 %v537_v39, 0.0  ;;  %v3682_v39 = vor.u32 %v4430_v49, %v3681_v38  ;;  %v3294_v38 = vor.u32 %v4325_v6, %v3291_v55  ;;  %v3694_v61 = vor.u32 %v4423_v58, %v3691_v47  ;;  %v3369_v6 = vld [vmem:[#allocation2 + $0xa8] sm:$0xf] }
 0x209   :  { %1654 = vmatpush.bf16.msra.mxu1 %v3278_v51  ;;  %v950_v32 = vunpack.c.l.b16 %v770_v29  ;;  %v3609_v51 = vld [vmem:[#allocation2 + $0x298] sm:$0xf]  ;;  %v4351_v55 = vld [vmem:[#allocation2 + $0xe4] sm:$0xf0] }
 0x20a   :  { %v715_v5 = vadd.f32 %v714_v3, %v627_v33  ;;  %v3610_v59 = vor.u32 %v4413_v52, %v3609_v51  ;;  %v3547_v33 = vld [vmem:[#allocation2 + $0x258] sm:$0xf0]  ;;  %v3353_v29 = vld [vmem:[#allocation2 + $0x98] sm:$0xf]  ;;  %v3758_v51 = vor.u32 %v4439_v46, %v3755_v13  ;;  %v3683_v52 = vld [vmem:[#allocation2 + $0x360] sm:$0xf0] }
 0x20b   :  { %v3550_v3 = vor.u32 %v4389_v63, %v3547_v33  ;;  %v3625_v63 = vld [vmem:[#allocation2 + $0x2a8] sm:$0xf] }
 0x20c   :  { %v4415_v33 = vld [vmem:[#allocation2 + $0x2e4] sm:$0xf0] }
 0x20d   :  { %v538_v40 = vpop.f32.mrf.mxu0  ;;  %v4335_v13 = vld [vmem:[#allocation2 + $0x64] sm:$0xf0] }
 0x20e   :  { %v539_v4 = vadd.f32 %v4595_v44, %v538_v40  ;;  %v3673_v44 = vld [vmem:[#allocation2 + $0x318] sm:$0xf]  ;;  %v4398_v40 = vld [vmem:[#allocation2 + $0x25c] sm:$0xf0] }
 0x210   :  { %v628_v28 = vmax.f32 %v539_v4, 0.0  ;;  %v3554_v4 = vor.u32 %v4398_v40, %v3553_v1  ;;  %v4407_v1 = vld [vmem:[#allocation2 + $0x2ac] sm:$0xf] }
 0x211   :  { %v3627_v40 = vld [vmem:[#allocation2 + $0x2e8] sm:$0xf0] }
 0x212   :  { %v716_v9 = vadd.f32 %v715_v5, %v628_v28  ;;  %v3481_v5 = vld [vmem:[#allocation2 + $0x198] sm:$0xf] }
 0x213   :  { %v4381_v28 = vld [vmem:[#allocation2 + $0x1d4] sm:$0xf0] }
 0x214   :  { %v717_v10 = vrot.slane %v716_v9, 4  ;;  %v3482_v11 = vor.u32 %v4381_v28, %v3481_v5  ;;  %v3630_v5 = vor.u32 %v4407_v1, %v3627_v40  ;;  %v3555_v28 = vld [vmem:[#allocation2 + $0x260] sm:$0xf0]  ;;  %v3705_v1 = vld [vmem:[#allocation2 + $0x338] sm:$0xf] }
 0x215   :  { %v4433_v40 = vld [vmem:[#allocation2 + $0x374] sm:$0xf0] }
 0x216   :  { %v718_v14 = vadd.f32 %v717_v10, %v716_v9  ;;  %v3489_v9 = vld [vmem:[#allocation2 + $0x1a0] sm:$0xf] }
 0x217   :  { %v4382_v10 = vld [vmem:[#allocation2 + $0x1dc] sm:$0xf0] }
 0x218   :  { %v719_v53 = vrot.slane %v718_v14, 2 }
 0x21a   :  { %v720_v19 = vadd.f32 %v719_v53, %v718_v14  ;;  %v3490_v14 = vor.u32 %v4382_v10, %v3489_v9  ;;  %v3417_v53 = vld [vmem:[#allocation2 + $0x118] sm:$0xf]  ;;  %v4391_v9 = vld [vmem:[#allocation2 + $0x22c] sm:$0xf] }
 0x21b   :  { %v3418_v23 = vor.u32 %v4365_v17, %v3417_v53  ;;  %v3563_v10 = vld [vmem:[#allocation2 + $0x268] sm:$0xf0]  ;;  %v3491_v17 = vld [vmem:[#allocation2 + $0x1e0] sm:$0xf0] }
 0x21c   :  { %v721_v20 = vrot.slane %v720_v19, 1  ;;  %v3566_v53 = vor.u32 %v4391_v9, %v3563_v10  ;;  %v3641_v9 = vld [vmem:[#allocation2 + $0x2b8] sm:$0xf] }
 0x21d   :  { %v4417_v10 = vld [vmem:[#allocation2 + $0x2f4] sm:$0xf0] }
 0x21e   :  { %v722_v48 = vadd.f32 %v721_v20, %v720_v19  ;;  %v3419_v19 = vld [vmem:[#allocation2 + $0x158] sm:$0xf0]  ;;  %v3425_v20 = vld [vmem:[#allocation2 + $0x120] sm:$0xf] }
 0x220   :  { %v761_v54 = vmul.f32 %v4854_v42, %v722_v48  ;;  %v3738_v42 = vor.u32 %v4445_v24, %v3737_v34  ;;  %v3422_v48 = vor.u32 %v4357_v18, %v3419_v19  ;;  %v4350_v34 = vld [vmem:[#allocation2 + $0xdc] sm:$0xf0]  ;;  %v3354_v24 = vor.u32 %v4349_v30, %v3353_v29  ;;  %v3497_v18 = vld [vmem:[#allocation2 + $0x1a8] sm:$0xf]  ;;  %v3427_v30 = vld [vmem:[#allocation2 + $0x160] sm:$0xf0] }
 0x221   :  { %v4383_v19 = vld [vmem:[#allocation2 + $0x1e4] sm:$0xf0] }
 0x222   :  { %v769_v31 = vpack.c.bf16 %v761_v54, %v761_v54  ;;  %v3426_v54 = vor.u32 %v4366_v22, %v3425_v20  ;;  %v4375_v20 = vld [vmem:[#allocation2 + $0x1ac] sm:$0xf] }
 0x223   :  { %v3499_v22 = vld [vmem:[#allocation2 + $0x1e8] sm:$0xf0] }
 0x224   :  { %v949_v16 = vunpack.c.l.b16 %v769_v31  ;;  %v4341_v31 = vld [vmem:[#allocation2 + $0x9c] sm:$0xf]  ;;  %v3502_v29 = vor.u32 %v4375_v20, %v3499_v22  ;;  %v3577_v20 = vld [vmem:[#allocation2 + $0x238] sm:$0xf] }
 0x225   :  { %v4401_v22 = vld [vmem:[#allocation2 + $0x274] sm:$0xf0] }
 0x226   :  { %v961_v36 = vsel %vm960_vm6, %v949_v16, %v4971_v25  ;;  %v3674_v25 = vor.u32 %v4429_v45, %v3673_v44  ;;  %v3355_v16 = vld [vmem:[#allocation2 + $0xd8] sm:$0xf0]  ;;  %v4447_v44 = vld [vmem:[#allocation2 + $0x3e4] sm:$0xf0]  ;;  %v3290_v45 = vor.u32 %v4333_v37, %v3289_v35  ;;  %v3363_v37 = vld [vmem:[#allocation2 + $0xe0] sm:$0xf0] }
 0x227   :  { %v963_v41 = vsel %vm962_vm7, %v950_v32, %v961_v36  ;;  %v3361_v32 = vld [vmem:[#allocation2 + $0xa0] sm:$0xf] }
 0x228   :  { %v965_v43 = vsel %vm964_vm8, %v951_v21, %v963_v41  ;;  %v3358_v21 = vor.u32 %v4341_v31, %v3355_v16  ;;  %v3362_v36 = vor.u32 %v4350_v34, %v3361_v32  ;;  %v3297_v41 = vld [vmem:[#allocation2 + $0x20] sm:$0xf]  ;;  %v3433_v31 = vld [vmem:[#allocation2 + $0x128] sm:$0xf]  ;;  %v4359_v32 = vld [vmem:[#allocation2 + $0x12c] sm:$0xf] }
 0x229   :  { %v5006_v0 = vpack.c.b16 %v965_v43, %v965_v43  ;;  %v4334_v43 = vld [vmem:[#allocation2 + $0x5c] sm:$0xf0]  ;;  %v4367_v16 = vld [vmem:[#allocation2 + $0x164] sm:$0xf0]  ;;  %v3435_v34 = vld [vmem:[#allocation2 + $0x168] sm:$0xf0] }
 0x22a   :  { %v3298_v49 = vor.u32 %v4334_v43, %v3297_v41  ;;  %v3434_v35 = vor.u32 %v4367_v16, %v3433_v31  ;;  %v4343_v41 = vld [vmem:[#allocation2 + $0xac] sm:$0xf]  ;;  %v4376_v31 = vld [vmem:[#allocation2 + $0x1b4] sm:$0xf] }
 0x22b   :  { %1616 = vmatmul.bf16.vlgmr.msrb.gmra.mxu1 %v5006_v0  ;;  %1629 = vmatmul.bf16.vlgmr.msra.gmra.mxu2 %v5006_v0  ;;  %v3371_v43 = vld [vmem:[#allocation2 + $0xe8] sm:$0xf0]  ;;  %v3507_v16 = vld [vmem:[#allocation2 + $0x1f0] sm:$0xf0] }
 0x22c   :  { %1642 = vmatmul.bf16.vlgmr.msrb.gmra.mxu3 %v5006_v0  ;;  %1686 = vmatpush.bf16.msrb.mxu1 %v3738_v42  ;;  %v4438_v42 = vld [vmem:[#allocation2 + $0x3a4] sm:$0xf]  ;;  %v3374_v46 = vor.u32 %v4343_v41, %v3371_v43  ;;  %v3449_v41 = vld [vmem:[#allocation2 + $0x138] sm:$0xf] }
 0x22d   :  { %1699 = vmatpush.bf16.msra.mxu2 %v3742_v15  ;;  %1712 = vmatpush.bf16.msrb.mxu3 %v3746_v26  ;;  %v3747_v15 = vld [vmem:[#allocation2 + $0x3e0] sm:$0xf0]  ;;  %v3753_v26 = vld [vmem:[#allocation2 + $0x3a8] sm:$0xf]  ;;  %v4369_v43 = vld [vmem:[#allocation2 + $0x174] sm:$0xf0] }
 0x230   :  { %1687 = vmatpush.bf16.msrb.mxu1 %v3674_v25  ;;  %v3750_v25 = vor.u32 %v4438_v42, %v3747_v15  ;;  %v3370_v15 = vor.u32 %v4351_v55, %v3369_v6  ;;  %v4360_v6 = vld [vmem:[#allocation2 + $0x134] sm:$0xf] }
 0x231   :  { %1700 = vmatpush.bf16.msra.mxu2 %v3678_v50  ;;  %1713 = vmatpush.bf16.msrb.mxu3 %v3682_v39  ;;  %v3754_v50 = vor.u32 %v4447_v44, %v3753_v26  ;;  %v4422_v39 = vld [vmem:[#allocation2 + $0x324] sm:$0xf]  ;;  %v3443_v55 = vld [vmem:[#allocation2 + $0x170] sm:$0xf0] }
 0x232   :  { %v4326_v26 = vld [vmem:[#allocation2 + $0x24] sm:$0xf] }
 0x233   :  { %v3299_v44 = vld [vmem:[#allocation2 + $0x60] sm:$0xf0] }
 0x234   :  { %1688 = vmatpush.bf16.msrb.mxu1 %v3610_v59  ;;  %v3686_v59 = vor.u32 %v4422_v39, %v3683_v52  ;;  %v4440_v39 = vld [vmem:[#allocation2 + $0x3b4] sm:$0xf]  ;;  %v3769_v52 = vld [vmem:[#allocation2 + $0x3b8] sm:$0xf] }
 0x235   :  { %1701 = vmatpush.bf16.msra.mxu2 %v3614_v60  ;;  %1714 = vmatpush.bf16.msrb.mxu3 %v3618_v27  ;;  %v3690_v60 = vor.u32 %v4431_v57, %v3689_v56  ;;  %v4406_v27 = vld [vmem:[#allocation2 + $0x2a4] sm:$0xf]  ;;  %v4449_v56 = vld [vmem:[#allocation2 + $0x3f4] sm:$0xf0]  ;;  %v3302_v57 = vor.u32 %v4326_v26, %v3299_v44  ;;  %v3450_v26 = vor.u32 %v4369_v43, %v3449_v41  ;;  %v3377_v44 = vld [vmem:[#allocation2 + $0xb0] sm:$0xf] }
 0x236   :  { %v4473_v41 = vld [vmem:[#allocation5 + $0xb8] sm:$0xff] }
 0x237   :  { %v4481_v43 = vld [vmem:[#allocation5 + $0xf8] sm:$0xff] }
 0x238   :  { %1689 = vmatpush.bf16.msrb.mxu1 %v3546_v2  ;;  %v3622_v2 = vor.u32 %v4406_v27, %v3619_v62  ;;  %v3770_v27 = vor.u32 %v4449_v56, %v3769_v52  ;;  %v4432_v62 = vld [vmem:[#allocation2 + $0x36c] sm:$0xf0]  ;;  %v4328_v56 = vld [vmem:[#allocation2 + $0x34] sm:$0xf] }
 0x239   :  { %1702 = vmatpush.bf16.msra.mxu2 %v3550_v3  ;;  %1715 = vmatpush.bf16.msrb.mxu3 %v3554_v4  ;;  %v3626_v3 = vor.u32 %v4415_v33, %v3625_v63  ;;  %v4390_v4 = vld [vmem:[#allocation2 + $0x224] sm:$0xf]  ;;  %v4424_v63 = vld [vmem:[#allocation2 + $0x334] sm:$0xf]  ;;  %v4336_v52 = vld [vmem:[#allocation2 + $0x6c] sm:$0xf0] }
 0x23a   :  { %v3699_v33 = vld [vmem:[#allocation2 + $0x370] sm:$0xf0] }
 0x23b   :  { %1655 = vmatmul.bf16.vlgmr.msra.gmra.mxu1 %v5006_v0  ;;  %1668 = vmatmul.bf16.vlgmr.msrb.gmra.mxu2 %v5006_v0 }
 0x23c   :  { %1681 = vmatmul.bf16.vlgmr.msra.gmra.mxu3 %v5006_v0  ;;  %1690 = vmatpush.bf16.msrb.mxu1 %v3482_v11  ;;  %v3558_v11 = vor.u32 %v4390_v4, %v3555_v28  ;;  %v3706_v4 = vor.u32 %v4433_v40, %v3705_v1  ;;  %v4416_v28 = vld [vmem:[#allocation2 + $0x2ec] sm:$0xf0]  ;;  %v4465_v1 = vld [vmem:[#allocation5 + $0x78] sm:$0xff] }
 0x23d   :  { %1703 = vmatpush.bf16.msra.mxu2 %v3486_v12  ;;  %1716 = vmatpush.bf16.msrb.mxu3 %v3490_v14  ;;  %v3562_v12 = vor.u32 %v4399_v8, %v3561_v7  ;;  %v4374_v14 = vld [vmem:[#allocation2 + $0x1a4] sm:$0xf]  ;;  %v4408_v7 = vld [vmem:[#allocation2 + $0x2b4] sm:$0xf]  ;;  %v4425_v40 = vld [vmem:[#allocation2 + $0x33c] sm:$0xf] }
 0x23e   :  { %v3635_v8 = vld [vmem:[#allocation2 + $0x2f0] sm:$0xf0] }
 0x240   :  { %1691 = vmatpush.bf16.msrb.mxu1 %v3418_v23  ;;  %v3494_v23 = vor.u32 %v4374_v14, %v3491_v17  ;;  %v3642_v14 = vor.u32 %v4417_v10, %v3641_v9  ;;  %v4400_v17 = vld [vmem:[#allocation2 + $0x26c] sm:$0xf0]  ;;  %v4455_v9 = vld [vmem:[#allocation5 + $0x28] sm:$0xff] }
 0x241   :  { %1704 = vmatpush.bf16.msra.mxu2 %v3422_v48  ;;  %1717 = vmatpush.bf16.msrb.mxu3 %v3426_v54  ;;  %v3498_v48 = vor.u32 %v4383_v19, %v3497_v18  ;;  %v4358_v54 = vld [vmem:[#allocation2 + $0x124] sm:$0xf]  ;;  %v4392_v18 = vld [vmem:[#allocation2 + $0x234] sm:$0xf]  ;;  %v4463_v10 = vld [vmem:[#allocation5 + $0x68] sm:$0xff] }
 0x242   :  { %v3571_v19 = vld [vmem:[#allocation2 + $0x270] sm:$0xf0] }
 0x244   :  { %1692 = vmatpush.bf16.msrb.mxu1 %v3354_v24  ;;  %v3430_v24 = vor.u32 %v4358_v54, %v3427_v30  ;;  %v3578_v54 = vor.u32 %v4401_v22, %v3577_v20  ;;  %v4384_v30 = vld [vmem:[#allocation2 + $0x1ec] sm:$0xf0]  ;;  %v4453_v22 = vld [vmem:[#allocation5 + $0x18] sm:$0xff] }
 0x245   :  { %1705 = vmatpush.bf16.msra.mxu2 %v3358_v21  ;;  %1718 = vmatpush.bf16.msrb.mxu3 %v3362_v36  ;;  %v4342_v21 = vld [vmem:[#allocation2 + $0xa4] sm:$0xf]  ;;  %v3438_v36 = vor.u32 %v4359_v32, %v3435_v34  ;;  %v3513_v32 = vld [vmem:[#allocation2 + $0x1b8] sm:$0xf] }
 0x246   :  { %v3366_v42 = vor.u32 %v4342_v21, %v3363_v37  ;;  %v4385_v34 = vld [vmem:[#allocation2 + $0x1f4] sm:$0xf0]  ;;  %v4368_v37 = vld [vmem:[#allocation2 + $0x16c] sm:$0xf0] }
 0x247   :  { %v3514_v21 = vor.u32 %v4385_v34, %v3513_v32  ;;  %v3387_v32 = vld [vmem:[#allocation2 + $0xf8] sm:$0xf0] }
 0x248   :  { %1693 = vmatpush.bf16.msrb.mxu1 %v3290_v45  ;;  %v3305_v45 = vld [vmem:[#allocation2 + $0x28] sm:$0xf] }
 0x249   :  { %1706 = vmatpush.bf16.msra.mxu2 %v3294_v38  ;;  %1719 = vmatpush.bf16.msrb.mxu3 %v3298_v49  ;;  %v4327_v38 = vld [vmem:[#allocation2 + $0x2c] sm:$0xf]  ;;  %v3306_v58 = vor.u32 %v4335_v13, %v3305_v45  ;;  %v4352_v45 = vld [vmem:[#allocation2 + $0xec] sm:$0xf0]  ;;  %v3379_v13 = vld [vmem:[#allocation2 + $0xf0] sm:$0xf0] }
 0x24a   :  { %v3307_v49 = vld [vmem:[#allocation2 + $0x68] sm:$0xf0] }
 0x24b   :  { %1694 = vmatmul.bf16.vlgmr.msrb.gmra.mxu1 %v5006_v0  ;;  %v3310_v47 = vor.u32 %v4327_v38, %v3307_v49  ;;  %v3385_v38 = vld [vmem:[#allocation2 + $0xb8] sm:$0xf] }
 0x24c   :  { %1725 = vmatpush.bf16.msra.mxu1 %v3750_v25  ;;  %1707 = vmatmul.bf16.vlgmr.msra.gmra.mxu2 %v5006_v0  ;;  %v3761_v25 = vld [vmem:[#allocation2 + $0x3b0] sm:$0xf]  ;;  %v4353_v49 = vld [vmem:[#allocation2 + $0xf4] sm:$0xf0] }
 0x24d   :  { %1738 = vmatpush.bf16.msrb.mxu2 %v3754_v50  ;;  %1751 = vmatpush.bf16.msra.mxu3 %v3758_v51  ;;  %v4448_v50 = vld [vmem:[#allocation2 + $0x3ec] sm:$0xf0]  ;;  %v3763_v51 = vld [vmem:[#allocation2 + $0x3f0] sm:$0xf0] }
 0x24e   :  { %1720 = vmatmul.bf16.vlgmr.msrb.gmra.mxu3 %v5006_v0 }
 0x250   :  { %1726 = vmatpush.bf16.msra.mxu1 %v3686_v59  ;;  %v3762_v59 = vor.u32 %v4448_v50, %v3761_v25  ;;  %v3378_v25 = vor.u32 %v4352_v45, %v3377_v44  ;;  %v4480_v44 = vld [vmem:[#allocation5 + $0xf0] sm:$0xff] }
 0x251   :  { %1739 = vmatpush.bf16.msrb.mxu2 %v3690_v60  ;;  %1752 = vmatpush.bf16.msra.mxu3 %v3694_v61  ;;  %v3766_v60 = vor.u32 %v4440_v39, %v3763_v51  ;;  %v3697_v61 = vld [vmem:[#allocation2 + $0x330] sm:$0xf]  ;;  %v3386_v39 = vor.u32 %v4353_v49, %v3385_v38  ;;  %v4479_v38 = vld [vmem:[#allocation5 + $0xe8] sm:$0xff] }
 0x252   :  { %v3313_v51 = vld [vmem:[#allocation2 + $0x30] sm:$0xf]  ;;  %v4487_v49 = vld [vmem:[#allocation5 + $0x128] sm:$0xff] }
 0x253   :  { %v4488_v45 = vld [vmem:[#allocation5 + $0x130] sm:$0xff] }
 0x254   :  { %1727 = vmatpush.bf16.msra.mxu1 %v3622_v2  ;;  %v3698_v2 = vor.u32 %v4432_v62, %v3697_v61 }
 0x255   :  { %1740 = vmatpush.bf16.msrb.mxu2 %v3626_v3  ;;  %1753 = vmatpush.bf16.msra.mxu3 %v3630_v5  ;;  %v3702_v3 = vor.u32 %v4424_v63, %v3699_v33  ;;  %v3633_v5 = vld [vmem:[#allocation2 + $0x2b0] sm:$0xf]  ;;  %v4457_v33 = vld [vmem:[#allocation5 + $0x38] sm:$0xff] }
 0x258   :  { %1728 = vmatpush.bf16.msra.mxu1 %v3558_v11  ;;  %v3634_v11 = vor.u32 %v4416_v28, %v3633_v5  ;;  %v4464_v5 = vld [vmem:[#allocation5 + $0x70] sm:$0xff]  ;;  %v4409_v28 = vld [vmem:[#allocation2 + $0x2bc] sm:$0xf] }
 0x259   :  { %1741 = vmatpush.bf16.msrb.mxu2 %v3562_v12  ;;  %1754 = vmatpush.bf16.msra.mxu3 %v3566_v53  ;;  %v3638_v12 = vor.u32 %v4408_v7, %v3635_v8  ;;  %v3569_v53 = vld [vmem:[#allocation2 + $0x230] sm:$0xf]  ;;  %v3643_v7 = vld [vmem:[#allocation2 + $0x2f8] sm:$0xf0] }
 0x25a   :  { %v3646_v8 = vor.u32 %v4409_v28, %v3643_v7  ;;  %v4475_v28 = vld [vmem:[#allocation5 + $0xc8] sm:$0xff] }
 0x25b   :  { %v4483_v7 = vld [vmem:[#allocation5 + $0x108] sm:$0xff] }
 0x25c   :  { %1729 = vmatpush.bf16.msra.mxu1 %v3494_v23  ;;  %v3570_v23 = vor.u32 %v4400_v17, %v3569_v53  ;;  %v4454_v53 = vld [vmem:[#allocation5 + $0x20] sm:$0xff] }
 0x25d   :  { %1742 = vmatpush.bf16.msrb.mxu2 %v3498_v48  ;;  %1755 = vmatpush.bf16.msra.mxu3 %v3502_v29  ;;  %v3574_v48 = vor.u32 %v4392_v18, %v3571_v19  ;;  %v3505_v29 = vld [vmem:[#allocation2 + $0x1b0] sm:$0xf]  ;;  %v4462_v17 = vld [vmem:[#allocation5 + $0x60] sm:$0xff]  ;;  %v4377_v18 = vld [vmem:[#allocation2 + $0x1bc] sm:$0xf] }
 0x25e   :  { %v3515_v19 = vld [vmem:[#allocation2 + $0x1f8] sm:$0xf0] }
 0x25f   :  { %v3518_v20 = vor.u32 %v4377_v18, %v3515_v19  ;;  %v4505_v18 = vld [vmem:[#allocation5 + $0x1b8] sm:$0xff] }
 0x260   :  { %1730 = vmatpush.bf16.msra.mxu1 %v3430_v24  ;;  %v3506_v24 = vor.u32 %v4384_v30, %v3505_v29  ;;  %v4452_v30 = vld [vmem:[#allocation5 + $0x10] sm:$0xff]  ;;  %v4513_v19 = vld [vmem:[#allocation5 + $0x1f8] sm:$0xff] }
 0x261   :  { %1743 = vmatpush.bf16.msrb.mxu2 %v3434_v35  ;;  %1756 = vmatpush.bf16.msra.mxu3 %v3438_v36  ;;  %v3510_v35 = vor.u32 %v4376_v31, %v3507_v16  ;;  %v3441_v36 = vld [vmem:[#allocation2 + $0x130] sm:$0xf]  ;;  %v4345_v16 = vld [vmem:[#allocation2 + $0xbc] sm:$0xf] }
 0x262   :  { %v4460_v31 = vld [vmem:[#allocation5 + $0x50] sm:$0xff]  ;;  %v3390_v34 = vor.u32 %v4345_v16, %v3387_v32 }
 0x263   :  { %v4512_v16 = vld [vmem:[#allocation5 + $0x1f0] sm:$0xff] }
 0x264   :  { %1731 = vmatpush.bf16.msra.mxu1 %v3366_v42  ;;  %v3442_v42 = vor.u32 %v4368_v37, %v3441_v36  ;;  %v3323_v36 = vld [vmem:[#allocation2 + $0x78] sm:$0xf0] }
 0x265   :  { %1744 = vmatpush.bf16.msrb.mxu2 %v3370_v15  ;;  %1757 = vmatpush.bf16.msra.mxu3 %v3374_v46  ;;  %v3446_v15 = vor.u32 %v4360_v6, %v3443_v55  ;;  %v4344_v46 = vld [vmem:[#allocation2 + $0xb4] sm:$0xf]  ;;  %v4450_v6 = vld [vmem:[#allocation5] sm:$0xff] }
 0x266   :  { %v3382_v50 = vor.u32 %v4344_v46, %v3379_v13  ;;  %v4458_v55 = vld [vmem:[#allocation5 + $0x40] sm:$0xff]  ;;  %v4471_v13 = vld [vmem:[#allocation5 + $0xa8] sm:$0xff] }
 0x268   :  { %1732 = vmatpush.bf16.msra.mxu1 %v3302_v57  ;;  %v3315_v57 = vld [vmem:[#allocation2 + $0x70] sm:$0xf0] }
 0x269   :  { %1745 = vmatpush.bf16.msrb.mxu2 %v3306_v58  ;;  %1758 = vmatpush.bf16.msra.mxu3 %v3310_v47  ;;  %v3321_v58 = vld [vmem:[#allocation2 + $0x38] sm:$0xf]  ;;  %v3318_v61 = vor.u32 %v4328_v56, %v3315_v57  ;;  %v4486_v56 = vld [vmem:[#allocation5 + $0x120] sm:$0xff] }
 0x26a   :  { %v4337_v47 = vld [vmem:[#allocation2 + $0x74] sm:$0xf0] }
 0x26b   :  { %1733 = vmatmul.bf16.vlgmr.msra.gmra.mxu1 %v5006_v0  ;;  %v3322_v62 = vor.u32 %v4337_v47, %v3321_v58  ;;  %v4469_v58 = vld [vmem:[#allocation5 + $0x98] sm:$0xff] }
 0x26c   :  { %1764 = vmatpush.bf16.msrb.mxu1 %v3762_v59  ;;  %1746 = vmatmul.bf16.vlgmr.msrb.gmra.mxu2 %v5006_v0  ;;  %v4441_v59 = vld [vmem:[#allocation2 + $0x3bc] sm:$0xf] }
 0x26d   :  { %1777 = vmatpush.bf16.msra.mxu2 %v3766_v60  ;;  %1790 = vmatpush.bf16.msrb.mxu3 %v3770_v27  ;;  %v3771_v60 = vld [vmem:[#allocation2 + $0x3f8] sm:$0xf0]  ;;  %v3314_v27 = vor.u32 %v4336_v52, %v3313_v51  ;;  %v4478_v52 = vld [vmem:[#allocation5 + $0xe0] sm:$0xff] }
 0x26e   :  { %1759 = vmatmul.bf16.vlgmr.msra.gmra.mxu3 %v5006_v0  ;;  %v3774_v63 = vor.u32 %v4441_v59, %v3771_v60  ;;  %v4477_v60 = vld [vmem:[#allocation5 + $0xd8] sm:$0xff] }
 0x270   :  { %1765 = vmatpush.bf16.msrb.mxu1 %v3698_v2  ;;  %v3707_v2 = vld [vmem:[#allocation2 + $0x378] sm:$0xf0] }
 0x271   :  { %1778 = vmatpush.bf16.msra.mxu2 %v3702_v3  ;;  %1791 = vmatpush.bf16.msrb.mxu3 %v3706_v4  ;;  %v3710_v3 = vor.u32 %v4425_v40, %v3707_v2  ;;  %v4456_v4 = vld [vmem:[#allocation5 + $0x30] sm:$0xff]  ;;  %v4467_v2 = vld [vmem:[#allocation5 + $0x88] sm:$0xff] }
 0x274   :  { %1766 = vmatpush.bf16.msrb.mxu1 %v3634_v11  ;;  %v4393_v11 = vld [vmem:[#allocation2 + $0x23c] sm:$0xf] }
 0x275   :  { %1779 = vmatpush.bf16.msra.mxu2 %v3638_v12  ;;  %1792 = vmatpush.bf16.msrb.mxu3 %v3642_v14  ;;  %v3579_v12 = vld [vmem:[#allocation2 + $0x278] sm:$0xf0] }
 0x276   :  { %v3582_v14 = vor.u32 %v4393_v11, %v3579_v12  ;;  %v4474_v12 = vld [vmem:[#allocation5 + $0xc0] sm:$0xff] }
 0x278   :  { %1767 = vmatpush.bf16.msrb.mxu1 %v3570_v23  ;;  %v4461_v23 = vld [vmem:[#allocation5 + $0x58] sm:$0xff] }
 0x279   :  { %1780 = vmatpush.bf16.msra.mxu2 %v3574_v48  ;;  %1793 = vmatpush.bf16.msrb.mxu3 %v3578_v54  ;;  %v4361_v48 = vld [vmem:[#allocation2 + $0x13c] sm:$0xf] }
 0x27a   :  { %v3451_v54 = vld [vmem:[#allocation2 + $0x178] sm:$0xf0] }
 0x27b   :  { %v3454_v29 = vor.u32 %v4361_v48, %v3451_v54 }
 0x27c   :  { %1768 = vmatpush.bf16.msrb.mxu1 %v3506_v24  ;;  %v4451_v24 = vld [vmem:[#allocation5 + $0x8] sm:$0xff] }
 0x27d   :  { %1781 = vmatpush.bf16.msra.mxu2 %v3510_v35  ;;  %1794 = vmatpush.bf16.msrb.mxu3 %v3514_v21  ;;  %v4459_v35 = vld [vmem:[#allocation5 + $0x48] sm:$0xff]  ;;  %v4329_v21 = vld [vmem:[#allocation2 + $0x3c] sm:$0xf] }
 0x27e   :  { %v3326_v37 = vor.u32 %v4329_v21, %v3323_v36 }
 0x280   :  { %1769 = vmatpush.bf16.msrb.mxu1 %v3442_v42  ;;  %v4489_v42 = vld [vmem:[#allocation5 + $0x138] sm:$0xff] }
 0x281   :  { %1782 = vmatpush.bf16.msra.mxu2 %v3446_v15  ;;  %1795 = vmatpush.bf16.msrb.mxu3 %v3450_v26  ;;  %v4472_v15 = vld [vmem:[#allocation5 + $0xb0] sm:$0xff]  ;;  %v5026_v26 = vld [vmem:[%s5072_s4] sm:$0xff] }
 0x282   :  { %v904_v46 = vperm.slane %v5026_v26, 0  ;;  %v905_v57 = vperm.slane %v5026_v26, 1 }
 0x284   :  { %1770 = vmatpush.bf16.msrb.mxu1 %v3378_v25 }
 0x285   :  { %1783 = vmatpush.bf16.msra.mxu2 %v3382_v50  ;;  %1796 = vmatpush.bf16.msrb.mxu3 %v3386_v39  ;;  %v4470_v39 = vld [vmem:[#allocation5 + $0xa0] sm:$0xff] }
 0x288   :  { %1771 = vmatpush.bf16.msrb.mxu1 %v3314_v27  ;;  %v4485_v27 = vld [vmem:[#allocation5 + $0x118] sm:$0xff] }
 0x289   :  { %1784 = vmatpush.bf16.msra.mxu2 %v3318_v61  ;;  %1797 = vmatpush.bf16.msrb.mxu3 %v3322_v62 }
 0x28b   :  { %1772 = vmatmul.bf16.vlgmr.msrb.gmra.mxu1 %v5006_v0 }
 0x28c   :  { %1803 = vmatpush.bf16.msra.mxu1 %v3774_v63  ;;  %1785 = vmatmul.bf16.vlgmr.msra.gmra.mxu2 %v5006_v0  ;;  %v4468_v63 = vld [vmem:[#allocation5 + $0x90] sm:$0xff] }
 0x28d   :  { %2860 = vmatpush.bf16.msrb.mxu2 %v4457_v33  ;;  %2873 = vmatpush.bf16.msra.mxu3 %v4465_v1  ;;  %v4476_v33 = vld [vmem:[#allocation5 + $0xd0] sm:$0xff] }
 0x28e   :  { %1798 = vmatmul.bf16.vlgmr.msrb.gmra.mxu3 %v5006_v0  ;;  %v4484_v1 = vld [vmem:[#allocation5 + $0x110] sm:$0xff] }
 0x290   :  { %1804 = vmatpush.bf16.msra.mxu1 %v3710_v3  ;;  %v907_v3 = vperm.slane %v5026_v26, 3 }
 0x291   :  { %2861 = vmatpush.bf16.msrb.mxu2 %v4456_v4  ;;  %2874 = vmatpush.bf16.msra.mxu3 %v4464_v5  ;;  %v906_v4 = vperm.slane %v5026_v26, 2 }
 0x294   :  { %1805 = vmatpush.bf16.msra.mxu1 %v3646_v8 }
 0x295   :  { %2862 = vmatpush.bf16.msrb.mxu2 %v4455_v9  ;;  %2875 = vmatpush.bf16.msra.mxu3 %v4463_v10  ;;  %v4466_v10 = vld [vmem:[#allocation5 + $0x80] sm:$0xff] }
 0x298   :  { %1806 = vmatpush.bf16.msra.mxu1 %v3582_v14  ;;  %v4482_v14 = vld [vmem:[#allocation5 + $0x100] sm:$0xff] }
 0x299   :  { %2863 = vmatpush.bf16.msrb.mxu2 %v4454_v53  ;;  %2876 = vmatpush.bf16.msra.mxu3 %v4462_v17  ;;  %v908_v53 = vperm.slane %v5026_v26, 4  ;;  %v4497_v17 = vld [vmem:[#allocation5 + $0x178] sm:$0xff] }
 0x29c   :  { %1807 = vmatpush.bf16.msra.mxu1 %v3518_v20 }
 0x29d   :  { %2864 = vmatpush.bf16.msrb.mxu2 %v4453_v22  ;;  %2877 = vmatpush.bf16.msra.mxu3 %v4461_v23 }
 0x2a0   :  { %1808 = vmatpush.bf16.msra.mxu1 %v3454_v29 }
 0x2a1   :  { %2865 = vmatpush.bf16.msrb.mxu2 %v4452_v30  ;;  %2878 = vmatpush.bf16.msra.mxu3 %v4460_v31  ;;  %v4496_v30 = vld [vmem:[#allocation5 + $0x170] sm:$0xff] }
 0x2a2   :  { %v4504_v31 = vld [vmem:[#allocation5 + $0x1b0] sm:$0xff] }
 0x2a4   :  { %1809 = vmatpush.bf16.msra.mxu1 %v3390_v34  ;;  %v4495_v34 = vld [vmem:[#allocation5 + $0x168] sm:$0xff] }
 0x2a5   :  { %2866 = vmatpush.bf16.msrb.mxu2 %v4451_v24  ;;  %2879 = vmatpush.bf16.msra.mxu3 %v4459_v35  ;;  %v4503_v24 = vld [vmem:[#allocation5 + $0x1a8] sm:$0xff] }
 0x2a6   :  { %v4511_v35 = vld [vmem:[#allocation5 + $0x1e8] sm:$0xff] }
 0x2a8   :  { %1810 = vmatpush.bf16.msra.mxu1 %v3326_v37  ;;  %v1617_v25 = vpop.f32.mrf.mxu1 }
 0x2a9   :  { %2867 = vmatpush.bf16.msrb.mxu2 %v4450_v6  ;;  %2880 = vmatpush.bf16.msra.mxu3 %v4458_v55  ;;  %v1618_v50 = vadd.f32 %v1617_v25, %v904_v46  ;;  %v4494_v6 = vld [vmem:[#allocation5 + $0x160] sm:$0xff]  ;;  %v4491_v25 = vld [vmem:[#allocation5 + $0x148] sm:$0xff] }
 0x2aa   :  { %v4502_v55 = vld [vmem:[#allocation5 + $0x1a0] sm:$0xff] }
 0x2ab   :  { %1811 = vmatmul.bf16.vlgmr.msra.gmra.mxu1 %v5006_v0  ;;  %v1816_v51 = vpack.c.bf16 %v1618_v50, %v1618_v50  ;;  %v4499_v50 = vld [vmem:[#allocation5 + $0x188] sm:$0xff] }
 0x2ac   :  { %2886 = vmatpush.bf16.msrb.mxu1 %v4473_v41  ;;  %v4510_v41 = vld [vmem:[#allocation5 + $0x1e0] sm:$0xff] }
 0x2ad   :  { %2899 = vmatpush.bf16.msra.mxu2 %v4481_v43  ;;  %2912 = vmatpush.bf16.msrb.mxu3 %v4489_v42  ;;  %v4493_v43 = vld [vmem:[#allocation5 + $0x158] sm:$0xff] }
 0x2ae   :  { %2868 = vmatmul.bf16.vlgmr.msrb.gmra.mxu2 %v1816_v51  ;;  %v1630_v0 = vpop.f32.mrf.mxu2  ;;  %v4501_v42 = vld [vmem:[#allocation5 + $0x198] sm:$0xff]  ;;  %v910_v51 = vperm.slane %v5026_v26, 6 }
 0x2af   :  { %v1631_v47 = vadd.f32 %v1630_v0, %v905_v57  ;;  %v1643_v59 = vpop.f32.mrf.mxu3 }
 0x2b0   :  { %2887 = vmatpush.bf16.msrb.mxu1 %v4472_v15  ;;  %v1619_v61 = vpop.f32.mrf.mxu1  ;;  %v1644_v11 = vadd.f32 %v1643_v59, %v906_v4  ;;  %v4509_v15 = vld [vmem:[#allocation5 + $0x1d8] sm:$0xff]  ;;  %v4536_v4 = vld [vmem:[#allocation5 + $0x2b0] sm:$0xff] }
 0x2b1   :  { %2900 = vmatpush.bf16.msra.mxu2 %v4480_v44  ;;  %2913 = vmatpush.bf16.msrb.mxu3 %v4488_v45  ;;  %v1817_v62 = vpack.c.bf16 %v1631_v47, %v1631_v47  ;;  %v4498_v47 = vld [vmem:[#allocation5 + $0x180] sm:$0xff]  ;;  %v4521_v61 = vld [vmem:[#allocation5 + $0x238] sm:$0xff] }
 0x2b2   :  { %v1818_v23 = vpack.c.bf16 %v1644_v11, %v1644_v11  ;;  %v4534_v11 = vld [vmem:[#allocation5 + $0x2a0] sm:$0xff] }
 0x2b3   :  { %2881 = vmatmul.bf16.vlgmr.msra.gmra.mxu3 %v1817_v62 }
 0x2b4   :  { %2888 = vmatpush.bf16.msrb.mxu1 %v4471_v13  ;;  %v4492_v13 = vld [vmem:[#allocation5 + $0x150] sm:$0xff] }
 0x2b5   :  { %2901 = vmatpush.bf16.msra.mxu2 %v4479_v38  ;;  %2914 = vmatpush.bf16.msrb.mxu3 %v4487_v49  ;;  %v4500_v38 = vld [vmem:[#allocation5 + $0x190] sm:$0xff] }
 0x2b6   :  { %v1632_v40 = vpop.f32.mrf.mxu2  ;;  %v4508_v49 = vld [vmem:[#allocation5 + $0x1d0] sm:$0xff] }
 0x2b7   :  { %v1645_v5 = vpop.f32.mrf.mxu3 }
 0x2b8   :  { %2889 = vmatpush.bf16.msrb.mxu1 %v4470_v39  ;;  %v1656_v8 = vpop.f32.mrf.mxu1  ;;  %v909_v39 = vperm.slane %v5026_v26, 5  ;;  %v4519_v5 = vld [vmem:[#allocation5 + $0x228] sm:$0xff] }
 0x2b9   :  { %2902 = vmatpush.bf16.msra.mxu2 %v4478_v52  ;;  %2915 = vmatpush.bf16.msrb.mxu3 %v4486_v56  ;;  %v1657_v9 = vadd.f32 %v1656_v8, %v907_v3  ;;  %v4507_v52 = vld [vmem:[#allocation5 + $0x1c8] sm:$0xff]  ;;  %v911_v56 = vperm.slane %v5026_v26, 7  ;;  %v4520_v26 = vld [vmem:[#allocation5 + $0x230] sm:$0xff]  ;;  %v4518_v8 = vld [vmem:[#allocation5 + $0x220] sm:$0xff] }
 0x2ba   :  { %v4528_v3 = vld [vmem:[#allocation5 + $0x270] sm:$0xff] }
 0x2bb   :  { %v1819_v20 = vpack.c.bf16 %v1657_v9, %v1657_v9 }
 0x2bc   :  { %2890 = vmatpush.bf16.msrb.mxu1 %v4469_v58  ;;  %v4490_v58 = vld [vmem:[#allocation5 + $0x140] sm:$0xff] }
 0x2bd   :  { %2903 = vmatpush.bf16.msra.mxu2 %v4477_v60  ;;  %2916 = vmatpush.bf16.msrb.mxu3 %v4485_v27  ;;  %v4506_v27 = vld [vmem:[#allocation5 + $0x1c0] sm:$0xff] }
 0x2be   :  { %v1669_v22 = vpop.f32.mrf.mxu2 }
 0x2bf   :  { %v1670_v48 = vadd.f32 %v1669_v22, %v908_v53  ;;  %v1682_v54 = vpop.f32.mrf.mxu3  ;;  %v4533_v53 = vld [vmem:[#allocation5 + $0x298] sm:$0xff]  ;;  %v4524_v22 = vld [vmem:[#allocation5 + $0x250] sm:$0xff] }
 0x2c0   :  { %2891 = vmatpush.bf16.msrb.mxu1 %v4468_v63  ;;  %v1658_v29 = vpop.f32.mrf.mxu1  ;;  %v1683_v59 = vadd.f32 %v1682_v54, %v909_v39  ;;  %v4529_v63 = vld [vmem:[#allocation5 + $0x278] sm:$0xff]  ;;  %v4515_v54 = vld [vmem:[#allocation5 + $0x208] sm:$0xff] }
 0x2c1   :  { %2904 = vmatpush.bf16.msra.mxu2 %v4476_v33  ;;  %2917 = vmatpush.bf16.msrb.mxu3 %v4484_v1  ;;  %v1820_v32 = vpack.c.bf16 %v1670_v48, %v1670_v48  ;;  %v4537_v33 = vld [vmem:[#allocation5 + $0x2b8] sm:$0xff]  ;;  %v5044_v48 = vld [vmem:[%s5072_s4 + $0x8] sm:$0xff] }
 0x2c2   :  { %v1821_v1 = vpack.c.bf16 %v1683_v59, %v1683_v59  ;;  %v912_v29 = vperm.slane %v5044_v48, 0 }
 0x2c4   :  { %2892 = vmatpush.bf16.msrb.mxu1 %v4467_v2 }
 0x2c5   :  { %2905 = vmatpush.bf16.msra.mxu2 %v4475_v28  ;;  %2918 = vmatpush.bf16.msrb.mxu3 %v4483_v7  ;;  %v4527_v28 = vld [vmem:[#allocation5 + $0x268] sm:$0xff] }
 0x2c6   :  { %v1671_v21 = vpop.f32.mrf.mxu2  ;;  %v4535_v7 = vld [vmem:[#allocation5 + $0x2a8] sm:$0xff] }
 0x2c7   :  { %v1684_v36 = vpop.f32.mrf.mxu3 }
 0x2c8   :  { %2893 = vmatpush.bf16.msrb.mxu1 %v4466_v10  ;;  %v1695_v37 = vpop.f32.mrf.mxu1  ;;  %v4526_v10 = vld [vmem:[#allocation5 + $0x260] sm:$0xff] }
 0x2c9   :  { %2906 = vmatpush.bf16.msra.mxu2 %v4474_v12  ;;  %2919 = vmatpush.bf16.msrb.mxu3 %v4482_v14  ;;  %v1696_v60 = vadd.f32 %v1695_v37, %v910_v51  ;;  %v4517_v12 = vld [vmem:[#allocation5 + $0x218] sm:$0xff]  ;;  %v4522_v36 = vld [vmem:[#allocation5 + $0x240] sm:$0xff] }
 0x2ca   :  { %v4525_v14 = vld [vmem:[#allocation5 + $0x258] sm:$0xff]  ;;  %v4530_v37 = vld [vmem:[#allocation5 + $0x280] sm:$0xff] }
 0x2cb   :  { %2894 = vmatmul.bf16.vlgmr.msrb.gmra.mxu1 %v1818_v23  ;;  %v1822_v40 = vpack.c.bf16 %v1696_v60, %v1696_v60  ;;  %v4532_v23 = vld [vmem:[#allocation5 + $0x290] sm:$0xff]  ;;  %v4542_v51 = vld [vmem:[#allocation5 + $0x2e0] sm:$0xff] }
 0x2cc   :  { %2925 = vmatpush.bf16.msra.mxu1 %v4497_v17  ;;  %2907 = vmatmul.bf16.vlgmr.msra.gmra.mxu2 %v1819_v20 }
 0x2cd   :  { %2938 = vmatpush.bf16.msrb.mxu2 %v4505_v18  ;;  %2951 = vmatpush.bf16.msra.mxu3 %v4513_v19  ;;  %v4516_v19 = vld [vmem:[#allocation5 + $0x210] sm:$0xff] }
 0x2ce   :  { %2920 = vmatmul.bf16.vlgmr.msrb.gmra.mxu3 %v1820_v32  ;;  %v914_v32 = vperm.slane %v5044_v48, 2 }
 0x2cf   :  { %v1708_v44 = vpop.f32.mrf.mxu2 }
 0x2d0   :  { %2926 = vmatpush.bf16.msra.mxu1 %v4496_v30  ;;  %v1697_v46 = vpop.f32.mrf.mxu1  ;;  %v1709_v62 = vadd.f32 %v1708_v44, %v911_v56  ;;  %v4523_v30 = vld [vmem:[#allocation5 + $0x248] sm:$0xff]  ;;  %v4558_v56 = vld [vmem:[#allocation5 + $0x360] sm:$0xff] }
 0x2d1   :  { %2939 = vmatpush.bf16.msrb.mxu2 %v4504_v31  ;;  %2952 = vmatpush.bf16.msra.mxu3 %v4512_v16  ;;  %v5034_v45 = vpop.f32.mrf.mxu3  ;;  %v4531_v31 = vld [vmem:[#allocation5 + $0x288] sm:$0xff]  ;;  %v913_v16 = vperm.slane %v5044_v48, 1 }
 0x2d2   :  { %v1823_v2 = vpack.c.bf16 %v1709_v62, %v1709_v62  ;;  %v1722_v21 = vadd.f32 %v5034_v45, %v912_v29  ;;  %v4560_v45 = vld [vmem:[#allocation5 + $0x370] sm:$0xff]  ;;  %v4574_v29 = vld [vmem:[#allocation5 + $0x3e0] sm:$0xff] }
 0x2d3   :  { %v4556_v62 = vld [vmem:[#allocation5 + $0x350] sm:$0xff] }
 0x2d4   :  { %2927 = vmatpush.bf16.msra.mxu1 %v4495_v34 }
 0x2d5   :  { %2940 = vmatpush.bf16.msrb.mxu2 %v4503_v24  ;;  %2953 = vmatpush.bf16.msra.mxu3 %v4511_v35  ;;  %v4514_v35 = vld [vmem:[#allocation5 + $0x200] sm:$0xff] }
 0x2d7   :  { %v1710_v57 = vpop.f32.mrf.mxu2 }
 0x2d8   :  { %2928 = vmatpush.bf16.msra.mxu1 %v4494_v6  ;;  %v4541_v57 = vld [vmem:[#allocation5 + $0x2d8] sm:$0xff] }
 0x2d9   :  { %2941 = vmatpush.bf16.msrb.mxu2 %v4502_v55  ;;  %2954 = vmatpush.bf16.msra.mxu3 %v4510_v41  ;;  %v1723_v0 = vpop.f32.mrf.mxu3  ;;  %v4545_v41 = vld [vmem:[#allocation5 + $0x2f8] sm:$0xff] }
 0x2da   :  { %v4549_v0 = vld [vmem:[#allocation5 + $0x318] sm:$0xff] }
 0x2dc   :  { %2929 = vmatpush.bf16.msra.mxu1 %v4493_v43  ;;  %v4553_v43 = vld [vmem:[#allocation5 + $0x338] sm:$0xff] }
 0x2dd   :  { %2942 = vmatpush.bf16.msrb.mxu2 %v4501_v42  ;;  %2955 = vmatpush.bf16.msra.mxu3 %v4509_v15  ;;  %v4561_v42 = vld [vmem:[#allocation5 + $0x378] sm:$0xff]  ;;  %v1824_v15 = vpack.c.bf16 %v1722_v21, %v1722_v21  ;;  %v4571_v21 = vld [vmem:[#allocation5 + $0x3c8] sm:$0xff] }
 0x2e0   :  { %2930 = vmatpush.bf16.msra.mxu1 %v4492_v13  ;;  %v4544_v13 = vld [vmem:[#allocation5 + $0x2f0] sm:$0xff] }
 0x2e1   :  { %2943 = vmatpush.bf16.msrb.mxu2 %v4500_v38  ;;  %2956 = vmatpush.bf16.msra.mxu3 %v4508_v49  ;;  %v4552_v38 = vld [vmem:[#allocation5 + $0x330] sm:$0xff]  ;;  %v4543_v49 = vld [vmem:[#allocation5 + $0x2e8] sm:$0xff] }
 0x2e4   :  { %2931 = vmatpush.bf16.msra.mxu1 %v4491_v25  ;;  %v4551_v25 = vld [vmem:[#allocation5 + $0x328] sm:$0xff] }
 0x2e5   :  { %2944 = vmatpush.bf16.msrb.mxu2 %v4499_v50  ;;  %2957 = vmatpush.bf16.msra.mxu3 %v4507_v52  ;;  %v4559_v50 = vld [vmem:[#allocation5 + $0x368] sm:$0xff]  ;;  %v4550_v52 = vld [vmem:[#allocation5 + $0x320] sm:$0xff] }
 0x2e8   :  { %2932 = vmatpush.bf16.msra.mxu1 %v4490_v58  ;;  %v1734_v9 = vpop.f32.mrf.mxu1  ;;  %v4557_v58 = vld [vmem:[#allocation5 + $0x358] sm:$0xff] }
 0x2e9   :  { %2945 = vmatpush.bf16.msrb.mxu2 %v4498_v47  ;;  %2958 = vmatpush.bf16.msra.mxu3 %v4506_v27  ;;  %v1735_v6 = vadd.f32 %v1734_v9, %v913_v16  ;;  %v4540_v27 = vld [vmem:[#allocation5 + $0x2d0] sm:$0xff]  ;;  %v4554_v9 = vld [vmem:[#allocation5 + $0x340] sm:$0xff] }
 0x2ea   :  { %v4564_v16 = vld [vmem:[#allocation5 + $0x390] sm:$0xff] }
 0x2eb   :  { %2933 = vmatmul.bf16.vlgmr.msra.gmra.mxu1 %v1821_v1  ;;  %v1825_v44 = vpack.c.bf16 %v1735_v6, %v1735_v6  ;;  %v915_v1 = vperm.slane %v5044_v48, 3 }
 0x2ec   :  { %2964 = vmatpush.bf16.msrb.mxu1 %v4521_v61  ;;  %2946 = vmatmul.bf16.vlgmr.msrb.gmra.mxu2 %v1822_v40  ;;  %v4548_v61 = vld [vmem:[#allocation5 + $0x310] sm:$0xff]  ;;  %v916_v40 = vperm.slane %v5044_v48, 4 }
 0x2ed   :  { %2977 = vmatpush.bf16.msra.mxu2 %v4529_v63  ;;  %2990 = vmatpush.bf16.msrb.mxu3 %v4537_v33  ;;  %v4539_v63 = vld [vmem:[#allocation5 + $0x2c8] sm:$0xff] }
 0x2ee   :  { %2959 = vmatmul.bf16.vlgmr.msra.gmra.mxu3 %v1823_v2  ;;  %v4547_v33 = vld [vmem:[#allocation5 + $0x308] sm:$0xff]  ;;  %v917_v2 = vperm.slane %v5044_v48, 5 }
 0x2ef   :  { %v1747_v17 = vpop.f32.mrf.mxu2 }
 0x2f0   :  { %2965 = vmatpush.bf16.msrb.mxu1 %v4520_v26  ;;  %v1736_v20 = vpop.f32.mrf.mxu1  ;;  %v1748_v55 = vadd.f32 %v1747_v17, %v914_v32  ;;  %v4555_v26 = vld [vmem:[#allocation5 + $0x348] sm:$0xff]  ;;  %v4568_v17 = vld [vmem:[#allocation5 + $0x3b0] sm:$0xff] }
 0x2f1   :  { %2978 = vmatpush.bf16.msra.mxu2 %v4528_v3  ;;  %2991 = vmatpush.bf16.msrb.mxu3 %v4536_v4  ;;  %v5039_v18 = vpop.f32.mrf.mxu3  ;;  %v4576_v20 = vld [vmem:[#allocation5 + $0x3f0] sm:$0xff] }
 0x2f2   :  { %v1826_v46 = vpack.c.bf16 %v1748_v55, %v1748_v55 }
 0x2f4   :  { %2966 = vmatpush.bf16.msrb.mxu1 %v4519_v5  ;;  %v4538_v5 = vld [vmem:[#allocation5 + $0x2c0] sm:$0xff] }
 0x2f5   :  { %2979 = vmatpush.bf16.msra.mxu2 %v4527_v28  ;;  %2992 = vmatpush.bf16.msrb.mxu3 %v4535_v7  ;;  %v4546_v28 = vld [vmem:[#allocation5 + $0x300] sm:$0xff]  ;;  %v1761_v7 = vadd.f32 %v5039_v18, %v915_v1  ;;  %v4567_v18 = vld [vmem:[#allocation5 + $0x3a8] sm:$0xff] }
 0x2f7   :  { %v1749_v34 = vpop.f32.mrf.mxu2 }
 0x2f8   :  { %2967 = vmatpush.bf16.msrb.mxu1 %v4518_v8  ;;  %v4572_v34 = vld [vmem:[#allocation5 + $0x3d0] sm:$0xff] }
 0x2f9   :  { %2980 = vmatpush.bf16.msra.mxu2 %v4526_v10  ;;  %2993 = vmatpush.bf16.msrb.mxu3 %v4534_v11  ;;  %v1762_v24 = vpop.f32.mrf.mxu3  ;;  %v4569_v10 = vld [vmem:[#allocation5 + $0x3b8] sm:$0xff] }
 0x2fa   :  { %v4563_v24 = vld [vmem:[#allocation5 + $0x388] sm:$0xff] }
 0x2fc   :  { %2968 = vmatpush.bf16.msrb.mxu1 %v4517_v12  ;;  %v4577_v12 = vld [vmem:[#allocation5 + $0x3f8] sm:$0xff] }
 0x2fd   :  { %2981 = vmatpush.bf16.msra.mxu2 %v4525_v14  ;;  %2994 = vmatpush.bf16.msrb.mxu3 %v4533_v53  ;;  %v1827_v14 = vpack.c.bf16 %v1761_v7, %v1761_v7 }
 0x300   :  { %2969 = vmatpush.bf16.msrb.mxu1 %v4516_v19 }
 0x301   :  { %2982 = vmatpush.bf16.msra.mxu2 %v4524_v22  ;;  %2995 = vmatpush.bf16.msrb.mxu3 %v4532_v23  ;;  %v4575_v22 = vld [vmem:[#allocation5 + $0x3e8] sm:$0xff]  ;;  %v4566_v23 = vld [vmem:[#allocation5 + $0x3a0] sm:$0xff] }
 0x304   :  { %2970 = vmatpush.bf16.msrb.mxu1 %v4515_v54 }
 0x305   :  { %2983 = vmatpush.bf16.msra.mxu2 %v4523_v30  ;;  %2996 = vmatpush.bf16.msrb.mxu3 %v4531_v31  ;;  %v4565_v30 = vld [vmem:[#allocation5 + $0x398] sm:$0xff] }
 0x306   :  { %v4573_v31 = vld [vmem:[#allocation5 + $0x3d8] sm:$0xff] }
 0x308   :  { %2971 = vmatpush.bf16.msrb.mxu1 %v4514_v35  ;;  %v1773_v39 = vpop.f32.mrf.mxu1  ;;  %v918_v35 = vperm.slane %v5044_v48, 6 }
 0x309   :  { %2984 = vmatpush.bf16.msra.mxu2 %v4522_v36  ;;  %2997 = vmatpush.bf16.msrb.mxu3 %v4530_v37  ;;  %v1774_v8 = vadd.f32 %v1773_v39, %v916_v40  ;;  %v919_v36 = vperm.slane %v5044_v48, 7  ;;  %v4562_v37 = vld [vmem:[#allocation5 + $0x380] sm:$0xff] }
 0x30b   :  { %2972 = vmatmul.bf16.vlgmr.msrb.gmra.mxu1 %v1824_v15  ;;  %v1828_v53 = vpack.c.bf16 %v1774_v8, %v1774_v8 }
 0x30c   :  { %3003 = vmatpush.bf16.msra.mxu1 %v4545_v41  ;;  %2985 = vmatmul.bf16.vlgmr.msra.gmra.mxu2 %v1825_v44  ;;  %v4570_v41 = vld [vmem:[#allocation5 + $0x3c0] sm:$0xff] }
 0x30d   :  { %3016 = vmatpush.bf16.msrb.mxu2 %v4553_v43  ;;  %3029 = vmatpush.bf16.msra.mxu3 %v4561_v42  ;;  %v4592_v42 = vld [vmem:[%s5074_s6] ss:$0 sm:$0xff] }
 0x30e   :  { %2998 = vmatmul.bf16.vlgmr.msrb.gmra.mxu3 %v1826_v46 }
 0x30f   :  { %v1786_v47 = vpop.f32.mrf.mxu2 }
 0x310   :  { %3004 = vmatpush.bf16.msra.mxu1 %v4544_v13  ;;  %v1775_v60 = vpop.f32.mrf.mxu1  ;;  %v1787_v11 = vadd.f32 %v1786_v47, %v917_v2 }
 0x311   :  { %3017 = vmatpush.bf16.msrb.mxu2 %v4552_v38  ;;  %3030 = vmatpush.bf16.msra.mxu3 %v4560_v45  ;;  %v5050_v59 = vpop.f32.mrf.mxu3 }
 0x312   :  { %v1829_v19 = vpack.c.bf16 %v1787_v11, %v1787_v11  ;;  %v1800_v55 = vadd.f32 %v5050_v59, %v918_v35 }
 0x314   :  { %3005 = vmatpush.bf16.msra.mxu1 %v4543_v49  ;;  %v1830_v15 = vpack.c.bf16 %v1800_v55, %v1800_v55 }
 0x315   :  { %3018 = vmatpush.bf16.msrb.mxu2 %v4551_v25  ;;  %3031 = vmatpush.bf16.msra.mxu3 %v4559_v50 }
 0x317   :  { %v1788_v3 = vpop.f32.mrf.mxu2 }
 0x318   :  { %3006 = vmatpush.bf16.msra.mxu1 %v4542_v51 }
 0x319   :  { %3019 = vmatpush.bf16.msrb.mxu2 %v4550_v52  ;;  %3032 = vmatpush.bf16.msra.mxu3 %v4558_v56  ;;  %v1801_v4 = vpop.f32.mrf.mxu3 }
 0x31c   :  { %3007 = vmatpush.bf16.msra.mxu1 %v4541_v57 }
 0x31d   :  { %3020 = vmatpush.bf16.msrb.mxu2 %v4549_v0  ;;  %3033 = vmatpush.bf16.msra.mxu3 %v4557_v58 }
 0x320   :  { %3008 = vmatpush.bf16.msra.mxu1 %v4540_v27 }
 0x321   :  { %3021 = vmatpush.bf16.msrb.mxu2 %v4548_v61  ;;  %3034 = vmatpush.bf16.msra.mxu3 %v4556_v62 }
 0x324   :  { %3009 = vmatpush.bf16.msra.mxu1 %v4539_v63 }
 0x325   :  { %3022 = vmatpush.bf16.msrb.mxu2 %v4547_v33  ;;  %3035 = vmatpush.bf16.msra.mxu3 %v4555_v26 }
 0x328   :  { %3010 = vmatpush.bf16.msra.mxu1 %v4538_v5  ;;  %v1812_v54 = vpop.f32.mrf.mxu1 }
 0x329   :  { %3023 = vmatpush.bf16.msrb.mxu2 %v4546_v28  ;;  %3036 = vmatpush.bf16.msra.mxu3 %v4554_v9  ;;  %v1813_v43 = vadd.f32 %v1812_v54, %v919_v36 }
 0x32b   :  { %3011 = vmatmul.bf16.vlgmr.msra.gmra.mxu1 %v1827_v14  ;;  %v1831_v44 = vpack.c.bf16 %v1813_v43, %v1813_v43 }
 0x32c   :  { %3042 = vmatpush.bf16.msrb.mxu1 %v4569_v10  ;;  %3024 = vmatmul.bf16.vlgmr.msrb.gmra.mxu2 %v1828_v53 }
 0x32d   :  { %3055 = vmatpush.bf16.msra.mxu2 %v4577_v12  ;;  %3037 = vmatmul.bf16.vlgmr.msra.gmra.mxu3 %v1829_v19 }
 0x330   :  { %3043 = vmatpush.bf16.msrb.mxu1 %v4568_v17  ;;  %v1814_v32 = vpop.f32.mrf.mxu1 }
 0x331   :  { %3056 = vmatpush.bf16.msra.mxu2 %v4576_v20  ;;  %v2869_v6 = vpop.f32.mrf.mxu2 }
 0x332   :  { %v2870_v46 = vadd.f32 %v4592_v42, %v2869_v6 }
 0x334   :  { %3044 = vmatpush.bf16.msrb.mxu1 %v4567_v18  ;;  %v3069_v18 = vld [vmem:[%s5075_s7] sm:$0xf] }
 0x335   :  { %3057 = vmatpush.bf16.msra.mxu2 %v4575_v22 }
 0x336   :  { %v2882_v13 = vpop.f32.mrf.mxu3 }
 0x337   :  { %v2883_v48 = vadd.f32 %v2882_v13, %v2870_v46 }
 0x338   :  { %3045 = vmatpush.bf16.msrb.mxu1 %v4566_v23 }
 0x339   :  { %3058 = vmatpush.bf16.msra.mxu2 %v4574_v29  ;;  %v2871_v38 = vpop.f32.mrf.mxu2  ;;  %v3070_v29 = vunpack.c.l.bf16 %v3069_v18 }
 0x33c   :  { %3046 = vmatpush.bf16.msrb.mxu1 %v4565_v30 }
 0x33d   :  { %3059 = vmatpush.bf16.msra.mxu2 %v4573_v31 }
 0x33e   :  { %v2884_v25 = vpop.f32.mrf.mxu3 }
 0x340   :  { %3047 = vmatpush.bf16.msrb.mxu1 %v4564_v16 }
 0x341   :  { %3060 = vmatpush.bf16.msra.mxu2 %v4572_v34 }
 0x344   :  { %3048 = vmatpush.bf16.msrb.mxu1 %v4563_v24 }
 0x345   :  { %3061 = vmatpush.bf16.msra.mxu2 %v4571_v21 }
 0x348   :  { %3049 = vmatpush.bf16.msrb.mxu1 %v4562_v37  ;;  %v2895_v45 = vpop.f32.mrf.mxu1 }
 0x349   :  { %3062 = vmatpush.bf16.msra.mxu2 %v4570_v41  ;;  %v2896_v49 = vadd.f32 %v2895_v45, %v2883_v48 }
 0x34b   :  { %3050 = vmatmul.bf16.vlgmr.msrb.gmra.mxu1 %v1830_v15 }
 0x34c   :  { %3063 = vmatmul.bf16.vlgmr.msra.gmra.mxu2 %v1831_v44 }
 0x34f   :  { %v2908_v50 = vpop.f32.mrf.mxu2 }
 0x350   :  { %v2909_v39 = vadd.f32 %v2908_v50, %v2896_v49  ;;  %v2897_v51 = vpop.f32.mrf.mxu1 }
 0x351   :  { %v2921_v52 = vpop.f32.mrf.mxu3 }
 0x352   :  { %v2922_v56 = vadd.f32 %v2921_v52, %v2909_v39 }
 0x357   :  { %v2910_v57 = vpop.f32.mrf.mxu2 }
 0x359   :  { %v2923_v0 = vpop.f32.mrf.mxu3 }
 0x368   :  { %v2934_v58 = vpop.f32.mrf.mxu1 }
 0x369   :  { %v2935_v47 = vadd.f32 %v2934_v58, %v2922_v56 }
 0x36f   :  { %v2947_v59 = vpop.f32.mrf.mxu2 }
 0x370   :  { %v2948_v60 = vadd.f32 %v2947_v59, %v2935_v47  ;;  %v2936_v61 = vpop.f32.mrf.mxu1 }
 0x371   :  { %v2960_v27 = vpop.f32.mrf.mxu3 }
 0x372   :  { %v2961_v62 = vadd.f32 %v2960_v27, %v2948_v60 }
 0x377   :  { %v2949_v63 = vpop.f32.mrf.mxu2 }
 0x379   :  { %v2962_v33 = vpop.f32.mrf.mxu3 }
 0x388   :  { %v2973_v1 = vpop.f32.mrf.mxu1 }
 0x389   :  { %v2974_v11 = vadd.f32 %v2973_v1, %v2961_v62 }
 0x38f   :  { %v2986_v40 = vpop.f32.mrf.mxu2 }
 0x390   :  { %v2975_v2 = vpop.f32.mrf.mxu1  ;;  %v2987_v12 = vadd.f32 %v2986_v40, %v2974_v11 }
 0x391   :  { %v2999_v26 = vpop.f32.mrf.mxu3 }
 0x392   :  { %v3000_v14 = vadd.f32 %v2999_v26, %v2987_v12 }
 0x397   :  { %v2988_v3 = vpop.f32.mrf.mxu2 }
 0x399   :  { %v3001_v4 = vpop.f32.mrf.mxu3 }
 0x3a8   :  { %v3012_v5 = vpop.f32.mrf.mxu1 }
 0x3a9   :  { %v3013_v53 = vadd.f32 %v3012_v5, %v3000_v14 }
 0x3af   :  { %v3025_v28 = vpop.f32.mrf.mxu2 }
 0x3b0   :  { %v3038_v7 = vpop.f32.mrf.mxu3  ;;  %v3014_v8 = vpop.f32.mrf.mxu1  ;;  %v3026_v17 = vadd.f32 %v3025_v28, %v3013_v53 }
 0x3b2   :  { %v3039_v20 = vadd.f32 %v3038_v7, %v3026_v17 }
 0x3b7   :  { %v3027_v9 = vpop.f32.mrf.mxu2 }
 0x3b8   :  { %v3040_v10 = vpop.f32.mrf.mxu3 }
 0x3c8   :  { %v3051_v19 = vpop.f32.mrf.mxu1 }
 0x3c9   :  { %v3052_v22 = vadd.f32 %v3051_v19, %v3039_v20 }
 0x3cf   :  { %v3064_v23 = vpop.f32.mrf.mxu2 }
 0x3d0   :  { %v3065_v54 = vadd.f32 %v3064_v23, %v3052_v22  ;;  %v3053_v30 = vpop.f32.mrf.mxu1 }
 0x3d2   :  { %v3068_v31 = vmax.f32 %v3065_v54, 0.0 }
 0x3d4   :  { %v3071_v16 = vmul.f32 %v3070_v29, %v3068_v31 }
 0x3d6   :  { %3072 = vst [vmem:[#allocation7] sm:$0xff] %v3071_v16 }
 0x3d7   :  { %v3066_v32 = vpop.f32.mrf.mxu2  ;;  %3083 = dma.vmem_to_hbm [thread:$0]  %s3079_s20, 128, %s3081_s23, [#allocation4]  }
 0x3d8   :  { %4672 = dma.done.wait [#allocation4], 128  }
 0x3d9   :  { %4673 = vsyncadd [#allocation4], 4294967168 }
 0x3da   :  { %3088 = vsyncpa [#allocation3], 1 }
 0x3db   :  { %3089 = vsyncpa [#allocation6], 1 }
 0x3dc   :  { %3090 = vsyncpa [#allocation4], 1 }

</bundles_post_ra>
